<compile_context>
chip_gen: v7x
topology: tpu7x:2x2x1
jax: 0.10.0
libtpu: 0.0.40
codegen_flags: <defaults>
</compile_context>

<pallas_src>
import functools
import math

import jax
import jax.numpy as jnp
from jax.experimental import pallas as pl
from jax.experimental.pallas import tpu as pltpu


def _round_up(x, m):
    return ((x + m - 1) // m) * m


def _actor_kernel(phi_max, max_action,
                  state_ref, action_ref,
                  w1_ref, b1_ref,
                  w2_ref, b2_ref,
                  w3_ref, b3_ref,
                  out_ref):
    """One batch-tile of the ORAAC actor forward pass.

    state_ref  : [TB, dim_state]                     f32
    action_ref : [TB, dim_action]                    f32
    w1         : [dim_state + dim_action, H1]        bf16
    w2 / w3    : [H1, H2] / [H2, dim_action]         bf16
    b1, b2, b3 : [1, H1], [1, H2], [1, dim_action]   f32
    out_ref    : [TB, dim_action]                    f32
    """
    action_f32 = action_ref[...]

    # Fused l1: lane-concat state|action in f32 (clean 32-bit lane layout),
    # cast once to bf16, single MXU pass over W1.  relu in f32.
    x_bf = jnp.concatenate([state_ref[...], action_f32], axis=1).astype(jnp.bfloat16)
    h1 = jnp.dot(x_bf, w1_ref[...], preferred_element_type=jnp.float32) + b1_ref[...]
    h1 = jnp.maximum(h1, 0.0)

    # l2 + relu
    h2 = jnp.dot(h1.astype(jnp.bfloat16), w2_ref[...],
                 preferred_element_type=jnp.float32) + b2_ref[...]
    h2 = jnp.maximum(h2, 0.0)

    # l3 -> scaled tanh perturbation, add risk-neutral action, clamp
    a3 = jnp.dot(h2.astype(jnp.bfloat16), w3_ref[...],
                 preferred_element_type=jnp.float32) + b3_ref[...]
    pert = phi_max * jnp.tanh(a3)
    out_ref[...] = jnp.clip(pert + action_f32, -max_action, max_action)


def pack_params(params):
    """Prepare raw f32 [in, out] params once: zero-pad hidden widths to
    multiples of 128 (identical math) and cast weights to bf16.  Do this once
    and reuse across forward calls."""
    w1, b1, w2, b2, w3, b3 = params
    H1 = _round_up(w1.shape[1], 128)   # 400 -> 512
    H2 = _round_up(w2.shape[1], 128)   # 300 -> 384

    def pad_to(a, shape):
        return jnp.pad(a, [(0, t - s) for s, t in zip(a.shape, shape)])

    w1p = pad_to(w1, (w1.shape[0], H1)).astype(jnp.bfloat16)
    b1p = pad_to(b1, (1, H1))
    w2p = pad_to(w2, (H1, H2)).astype(jnp.bfloat16)
    b2p = pad_to(b2, (1, H2))
    w3p = pad_to(w3, (H2, w3.shape[1])).astype(jnp.bfloat16)
    return (w1p, b1p, w2p, b2p, w3p, b3)


def oraac_actor_forward(state, action, packed, *, max_action, lamda=0.05,
                        batch_tile=2048):
    """Pallas wrapper reproducing ORAAC_Actor.forward semantics."""
    w1, b1, w2, b2, w3, b3 = packed
    B, dim_state = state.shape
    _, dim_action = action.shape
    H1, H2 = w1.shape[1], w2.shape[1]

    # --- balanced batch tiles -------------------------------------------
    n_tiles = pl.cdiv(B, batch_tile)
    if B >= 256:                       # enough rows for two useful tiles:
        n_tiles = max(n_tiles, 2)      #   let v7x's 2 TensorCores both work
    if n_tiles > 1 and n_tiles % 2:
        n_tiles += 1                   # even grid -> balanced megacore split
    tb = _round_up(pl.cdiv(B, n_tiles), 8)
    grid = (pl.cdiv(B, tb),)

    kernel = functools.partial(
        _actor_kernel, float(lamda) * float(max_action), float(max_action))

    # --- scheduler hint + VMEM budget -----------------------------------
    weight_bytes = ((dim_state + dim_action) * H1 + H1 * H2
                    + H2 * dim_action) * 2 + (H1 + H2 + dim_action) * 4
    cost = pl.CostEstimate(
        flops=2 * B * ((dim_state + dim_action) * H1 + H1 * H2 + H2 * dim_action),
        transcendentals=B * dim_action,
        bytes_accessed=weight_bytes
        + B * (dim_state + dim_action) * 4   # inputs
        + B * dim_action * 4)                # output

    # f32 h1/h2 + bf16 casts + concat LHS per row, double-buffered batch I/O,
    # resident weights; 2x headroom, floor 32 MiB (v5e scoped default is 16).
    per_row = (H1 + H2 + dim_state + dim_action) * (4 + 2)
    vmem_est = tb * per_row + 2 * tb * (dim_state + 2 * dim_action) * 4 + weight_bytes
    vmem_limit = int(min(max(2 * vmem_est, 32 << 20), 48 << 20))

    def batch_spec(d):
        return pl.BlockSpec((tb, d), lambda i: (i, 0))

    def call(single_buffer_weights):
        mode = {"pipeline_mode": pl.Buffered(1)} if single_buffer_weights else {}

        def resident(a):
            # Constant index_map: block stays VMEM-resident across the grid,
            # so a second pipeline buffer is pure waste -> single-buffer it.
            return pl.BlockSpec(a.shape, lambda i: (0,) * a.ndim, **mode)

        return pl.pallas_call(
            kernel,
            out_shape=jax.ShapeDtypeStruct((B, dim_action), jnp.float32),
            grid=grid,
            in_specs=[batch_spec(dim_state), batch_spec(dim_action),
                      resident(w1), resident(b1),
                      resident(w2), resident(b2),
                      resident(w3), resident(b3)],
            out_specs=pl.BlockSpec((tb, dim_action), lambda i: (i, 0)),
            compiler_params=pltpu.CompilerParams(
                dimension_semantics=("parallel",),
                vmem_limit_bytes=vmem_limit),
            cost_estimate=cost,
        )(state, action, w1, b1, w2, b2, w3, b3)

    try:
        return call(True)
    except Exception:
        # pl.Buffered(1) (single-buffering) not accepted by this jax/libtpu
        # build -> fall back to the default double-buffered (still correct,
        # just ~420 KiB extra VMEM for the dead weight copies).
        return call(False)


def init_params(key, dim_state, dim_action):
    """PyTorch nn.Linear-style init: U(-1/sqrt(fan_in), 1/sqrt(fan_in)).
    Weights stored [in, out]; biases as [1, out]."""
    dims = [(dim_state + dim_action, 400), (400, 300), (300, dim_action)]
    params = []
    for (fan_in, fan_out) in dims:
        key, kw, kb = jax.random.split(key, 3)
        bound = 1.0 / math.sqrt(fan_in)
        w = jax.random.uniform(kw, (fan_in, fan_out), jnp.float32, -bound, bound)
        b = jax.random.uniform(kb, (1, fan_out), jnp.float32, -bound, bound)
        params += [w, b]
    return tuple(params)


def reference_forward(state, action, params, *, max_action, lamda=0.05):
    """Plain-JAX f32 reference of the PyTorch forward."""
    w1, b1, w2, b2, w3, b3 = params
    x = jnp.concatenate([state, action], axis=1)
    a = jax.nn.relu(x @ w1 + b1)
    a = jax.nn.relu(a @ w2 + b2)
    a = lamda * max_action * jnp.tanh(a @ w3 + b3)
    return jnp.clip(a + action, -max_action, max_action)


# TODO(synk): the module's tau-based soft parameter update (params setter) is
# a training-side op, not part of the forward pass, and is not implemented.

if __name__ == "__main__":
    dim_state, dim_action = 16, 4
    max_action = 1.0
    lamda = 0.05

    key = jax.random.PRNGKey(0)
    kp, kd = jax.random.split(key)

    params = init_params(kp, dim_state, dim_action)
    packed = pack_params(params)

    # small batch (module-typical), one batch hitting the 2x balanced-tile
    # path (640 -> 2x320), and one with a partial last tile (1000 -> 504+496).
    for batch in (2, 640, 1000):
        kd, k1, k2 = jax.random.split(kd, 3)
        state = jax.random.normal(k1, (batch, dim_state), jnp.float32)
        action = jnp.tanh(jax.random.normal(k2, (batch, dim_action), jnp.float32))

        out = oraac_actor_forward(state, action, packed,
                                  max_action=max_action, lamda=lamda)
        out = jax.block_until_ready(out)

        ref = reference_forward(state, action, params,
                                max_action=max_action, lamda=lamda)
        assert out.shape == (batch, dim_action)
        assert bool(jnp.all(jnp.isfinite(out)))
        # bf16 matmuls vs f32 reference -> loosened tolerance
        assert jnp.allclose(out, ref, atol=2e-2, rtol=2e-2), (out[:4], ref[:4])

    print("KERNEL_OK")
</pallas_src>

<mosaic_0001>
module attributes {stable_mosaic.version = 11 : i64} {
  func.func @_actor_kernel(%arg0: i32, %arg1: memref<8x16xf32, #tpu.memory_space<vmem>>, %arg2: memref<8x4xf32, #tpu.memory_space<vmem>>, %arg3: memref<20x512xbf16, #tpu.memory_space<vmem>>, %arg4: memref<1x512xf32, #tpu.memory_space<vmem>>, %arg5: memref<512x384xbf16, #tpu.memory_space<vmem>>, %arg6: memref<1x384xf32, #tpu.memory_space<vmem>>, %arg7: memref<384x4xbf16, #tpu.memory_space<vmem>>, %arg8: memref<1x4xf32, #tpu.memory_space<vmem>>, %arg9: memref<8x4xf32, #tpu.memory_space<vmem>>) attributes {dimension_semantics = [#tpu.dimension_semantics<parallel>], iteration_bounds = array<i64: 1>, scalar_prefetch = 0 : i64, scratch_operands = 0 : i64, tpu.core_type = #tpu.core_type<tc>, window_params = [{transform_indices = @transform_0, window_bounds = array<i64: 8, 16>}, {transform_indices = @transform_1, window_bounds = array<i64: 8, 4>}, {pipeline_mode = #tpu.pipeline_mode<synchronous>, transform_indices = @transform_2, window_bounds = array<i64: 20, 512>}, {pipeline_mode = #tpu.pipeline_mode<synchronous>, transform_indices = @transform_3, window_bounds = array<i64: 1, 512>}, {pipeline_mode = #tpu.pipeline_mode<synchronous>, transform_indices = @transform_4, window_bounds = array<i64: 512, 384>}, {pipeline_mode = #tpu.pipeline_mode<synchronous>, transform_indices = @transform_5, window_bounds = array<i64: 1, 384>}, {pipeline_mode = #tpu.pipeline_mode<synchronous>, transform_indices = @transform_6, window_bounds = array<i64: 384, 4>}, {pipeline_mode = #tpu.pipeline_mode<synchronous>, transform_indices = @transform_7, window_bounds = array<i64: 1, 4>}, {transform_indices = @transform_8, window_bounds = array<i64: 8, 4>}]} {
    %c0 = arith.constant 0 : index
    %c0_0 = arith.constant 0 : index
    %0 = vector.load %arg2[%c0, %c0_0] : memref<8x4xf32, #tpu.memory_space<vmem>>, vector<8x4xf32>
    %c0_1 = arith.constant 0 : index
    %c0_2 = arith.constant 0 : index
    %1 = vector.load %arg1[%c0_1, %c0_2] : memref<8x16xf32, #tpu.memory_space<vmem>>, vector<8x16xf32>
    %2 = tpu.concatenate %1, %0 in 1 : vector<8x16xf32>, vector<8x4xf32> -> vector<8x20xf32>
    %3 = arith.truncf %2 : vector<8x20xf32> to vector<8x20xbf16>
    %c0_3 = arith.constant 0 : index
    %c0_4 = arith.constant 0 : index
    %4 = vector.load %arg3[%c0_3, %c0_4] : memref<20x512xbf16, #tpu.memory_space<vmem>>, vector<20x512xbf16>
    %cst = arith.constant dense<0.000000e+00> : vector<8x512xf32>
    %5 = tpu.matmul %3, %4, %cst {dimension_numbers = #tpu.dot_dimension_numbers<[1], [0], [0], [1], [0, 0, 1, 1], [], []>} : vector<8x20xbf16>, vector<20x512xbf16>, vector<8x512xf32> -> vector<8x512xf32>
    %c0_5 = arith.constant 0 : index
    %c0_6 = arith.constant 0 : index
    %6 = vector.load %arg4[%c0_5, %c0_6] : memref<1x512xf32, #tpu.memory_space<vmem>>, vector<1x512xf32>
    %7 = vector.broadcast %6 : vector<1x512xf32> to vector<8x512xf32>
    %8 = arith.addf %5, %7 : vector<8x512xf32>
    %cst_7 = arith.constant 0.000000e+00 : f32
    %9 = vector.broadcast %cst_7 : f32 to vector<8x512xf32>
    %10 = arith.maximumf %8, %9 : vector<8x512xf32>
    %11 = arith.truncf %10 : vector<8x512xf32> to vector<8x512xbf16>
    %c0_8 = arith.constant 0 : index
    %c0_9 = arith.constant 0 : index
    %12 = vector.load %arg5[%c0_8, %c0_9] : memref<512x384xbf16, #tpu.memory_space<vmem>>, vector<512x384xbf16>
    %cst_10 = arith.constant dense<0.000000e+00> : vector<8x384xf32>
    %13 = tpu.matmul %11, %12, %cst_10 {dimension_numbers = #tpu.dot_dimension_numbers<[1], [0], [0], [1], [0, 0, 1, 1], [], []>} : vector<8x512xbf16>, vector<512x384xbf16>, vector<8x384xf32> -> vector<8x384xf32>
    %c0_11 = arith.constant 0 : index
    %c0_12 = arith.constant 0 : index
    %14 = vector.load %arg6[%c0_11, %c0_12] : memref<1x384xf32, #tpu.memory_space<vmem>>, vector<1x384xf32>
    %15 = vector.broadcast %14 : vector<1x384xf32> to vector<8x384xf32>
    %16 = arith.addf %13, %15 : vector<8x384xf32>
    %cst_13 = arith.constant 0.000000e+00 : f32
    %17 = vector.broadcast %cst_13 : f32 to vector<8x384xf32>
    %18 = arith.maximumf %16, %17 : vector<8x384xf32>
    %19 = arith.truncf %18 : vector<8x384xf32> to vector<8x384xbf16>
    %c0_14 = arith.constant 0 : index
    %c0_15 = arith.constant 0 : index
    %20 = vector.load %arg7[%c0_14, %c0_15] : memref<384x4xbf16, #tpu.memory_space<vmem>>, vector<384x4xbf16>
    %cst_16 = arith.constant dense<0.000000e+00> : vector<8x4xf32>
    %21 = tpu.matmul %19, %20, %cst_16 {dimension_numbers = #tpu.dot_dimension_numbers<[1], [0], [0], [1], [0, 0, 1, 1], [], []>} : vector<8x384xbf16>, vector<384x4xbf16>, vector<8x4xf32> -> vector<8x4xf32>
    %c0_17 = arith.constant 0 : index
    %c0_18 = arith.constant 0 : index
    %22 = vector.load %arg8[%c0_17, %c0_18] : memref<1x4xf32, #tpu.memory_space<vmem>>, vector<1x4xf32>
    %23 = vector.broadcast %22 : vector<1x4xf32> to vector<8x4xf32>
    %24 = arith.addf %21, %23 : vector<8x4xf32>
    %25 = math.tanh %24 : vector<8x4xf32>
    %cst_19 = arith.constant 5.000000e-02 : f32
    %26 = vector.broadcast %cst_19 : f32 to vector<8x4xf32>
    %27 = arith.mulf %26, %25 : vector<8x4xf32>
    %28 = arith.addf %27, %0 : vector<8x4xf32>
    %cst_20 = arith.constant -1.000000e+00 : f32
    %cst_21 = arith.constant 1.000000e+00 : f32
    %29 = vector.broadcast %cst_20 : f32 to vector<8x4xf32>
    %30 = arith.maximumf %29, %28 : vector<8x4xf32>
    %31 = vector.broadcast %cst_21 : f32 to vector<8x4xf32>
    %32 = arith.minimumf %31, %30 : vector<8x4xf32>
    %c0_22 = arith.constant 0 : index
    %c0_23 = arith.constant 0 : index
    %33 = vector.load %arg9[%c0_22, %c0_23] : memref<8x4xf32, #tpu.memory_space<vmem>>, vector<8x4xf32>
    tpu.vector_store %arg9[%c0_22, %c0_23], %32 {strides = array<i32>} : memref<8x4xf32, #tpu.memory_space<vmem>>, vector<8x4xf32>,
    return
  }
  func.func @transform_0(%arg0: i32) -> (i32, i32) {
    %c0_i32 = arith.constant 0 : i32
    %c0_i32_0 = arith.constant 0 : i32
    return %arg0, %c0_i32 : i32, i32
  }
  func.func @transform_1(%arg0: i32) -> (i32, i32) {
    %c0_i32 = arith.constant 0 : i32
    %c0_i32_0 = arith.constant 0 : i32
    return %arg0, %c0_i32 : i32, i32
  }
  func.func @transform_2(%arg0: i32) -> (i32, i32) {
    %c0_i32 = arith.constant 0 : i32
    %c0_i32_0 = arith.constant 0 : i32
    %c0_i32_1 = arith.constant 0 : i32
    return %c0_i32, %c0_i32_0 : i32, i32
  }
  func.func @transform_3(%arg0: i32) -> (i32, i32) {
    %c0_i32 = arith.constant 0 : i32
    %c0_i32_0 = arith.constant 0 : i32
    %c0_i32_1 = arith.constant 0 : i32
    return %c0_i32, %c0_i32_0 : i32, i32
  }
  func.func @transform_4(%arg0: i32) -> (i32, i32) {
    %c0_i32 = arith.constant 0 : i32
    %c0_i32_0 = arith.constant 0 : i32
    %c0_i32_1 = arith.constant 0 : i32
    return %c0_i32, %c0_i32_0 : i32, i32
  }
  func.func @transform_5(%arg0: i32) -> (i32, i32) {
    %c0_i32 = arith.constant 0 : i32
    %c0_i32_0 = arith.constant 0 : i32
    %c0_i32_1 = arith.constant 0 : i32
    return %c0_i32, %c0_i32_0 : i32, i32
  }
  func.func @transform_6(%arg0: i32) -> (i32, i32) {
    %c0_i32 = arith.constant 0 : i32
    %c0_i32_0 = arith.constant 0 : i32
    %c0_i32_1 = arith.constant 0 : i32
    return %c0_i32, %c0_i32_0 : i32, i32
  }
  func.func @transform_7(%arg0: i32) -> (i32, i32) {
    %c0_i32 = arith.constant 0 : i32
    %c0_i32_0 = arith.constant 0 : i32
    %c0_i32_1 = arith.constant 0 : i32
    return %c0_i32, %c0_i32_0 : i32, i32
  }
  func.func @transform_8(%arg0: i32) -> (i32, i32) {
    %c0_i32 = arith.constant 0 : i32
    %c0_i32_0 = arith.constant 0 : i32
    return %arg0, %c0_i32 : i32, i32
  }
}

module attributes {stable_mosaic.version = 11 : i64} {
  func.func @_actor_kernel(%arg0: i32, %arg1: memref<8x16xf32, #tpu.memory_space<vmem>>, %arg2: memref<8x4xf32, #tpu.memory_space<vmem>>, %arg3: memref<20x512xbf16, #tpu.memory_space<vmem>>, %arg4: memref<1x512xf32, #tpu.memory_space<vmem>>, %arg5: memref<512x384xbf16, #tpu.memory_space<vmem>>, %arg6: memref<1x384xf32, #tpu.memory_space<vmem>>, %arg7: memref<384x4xbf16, #tpu.memory_space<vmem>>, %arg8: memref<1x4xf32, #tpu.memory_space<vmem>>, %arg9: memref<8x4xf32, #tpu.memory_space<vmem>>) attributes {dimension_semantics = [#tpu.dimension_semantics<parallel>], iteration_bounds = array<i64: 1>, scalar_prefetch = 0 : i64, scratch_operands = 0 : i64, tpu.core_type = #tpu.core_type<tc>, window_params = [{transform_indices = @transform_0, window_bounds = array<i64: 8, 16>}, {transform_indices = @transform_1, window_bounds = array<i64: 8, 4>}, {pipeline_mode = #tpu.pipeline_mode<synchronous>, transform_indices = @transform_2, window_bounds = array<i64: 20, 512>}, {pipeline_mode = #tpu.pipeline_mode<synchronous>, transform_indices = @transform_3, window_bounds = array<i64: 1, 512>}, {pipeline_mode = #tpu.pipeline_mode<synchronous>, transform_indices = @transform_4, window_bounds = array<i64: 512, 384>}, {pipeline_mode = #tpu.pipeline_mode<synchronous>, transform_indices = @transform_5, window_bounds = array<i64: 1, 384>}, {pipeline_mode = #tpu.pipeline_mode<synchronous>, transform_indices = @transform_6, window_bounds = array<i64: 384, 4>}, {pipeline_mode = #tpu.pipeline_mode<synchronous>, transform_indices = @transform_7, window_bounds = array<i64: 1, 4>}, {transform_indices = @transform_8, window_bounds = array<i64: 8, 4>}]} {
    %c0 = arith.constant 0 : index
    %c0_0 = arith.constant 0 : index
    %0 = vector.load %arg2[%c0, %c0_0] : memref<8x4xf32, #tpu.memory_space<vmem>>, vector<8x4xf32>
    %c0_1 = arith.constant 0 : index
    %c0_2 = arith.constant 0 : index
    %1 = vector.load %arg1[%c0_1, %c0_2] : memref<8x16xf32, #tpu.memory_space<vmem>>, vector<8x16xf32>
    %2 = tpu.concatenate %1, %0 in 1 : vector<8x16xf32>, vector<8x4xf32> -> vector<8x20xf32>
    %3 = arith.truncf %2 : vector<8x20xf32> to vector<8x20xbf16>
    %c0_3 = arith.constant 0 : index
    %c0_4 = arith.constant 0 : index
    %4 = vector.load %arg3[%c0_3, %c0_4] : memref<20x512xbf16, #tpu.memory_space<vmem>>, vector<20x512xbf16>
    %cst = arith.constant dense<0.000000e+00> : vector<8x512xf32>
    %5 = tpu.matmul %3, %4, %cst {dimension_numbers = #tpu.dot_dimension_numbers<[1], [0], [0], [1], [0, 0, 1, 1], [], []>} : vector<8x20xbf16>, vector<20x512xbf16>, vector<8x512xf32> -> vector<8x512xf32>
    %c0_5 = arith.constant 0 : index
    %c0_6 = arith.constant 0 : index
    %6 = vector.load %arg4[%c0_5, %c0_6] : memref<1x512xf32, #tpu.memory_space<vmem>>, vector<1x512xf32>
    %7 = vector.broadcast %6 : vector<1x512xf32> to vector<8x512xf32>
    %8 = arith.addf %5, %7 : vector<8x512xf32>
    %cst_7 = arith.constant 0.000000e+00 : f32
    %9 = vector.broadcast %cst_7 : f32 to vector<8x512xf32>
    %10 = arith.maximumf %8, %9 : vector<8x512xf32>
    %11 = arith.truncf %10 : vector<8x512xf32> to vector<8x512xbf16>
    %c0_8 = arith.constant 0 : index
    %c0_9 = arith.constant 0 : index
    %12 = vector.load %arg5[%c0_8, %c0_9] : memref<512x384xbf16, #tpu.memory_space<vmem>>, vector<512x384xbf16>
    %cst_10 = arith.constant dense<0.000000e+00> : vector<8x384xf32>
    %13 = tpu.matmul %11, %12, %cst_10 {dimension_numbers = #tpu.dot_dimension_numbers<[1], [0], [0], [1], [0, 0, 1, 1], [], []>} : vector<8x512xbf16>, vector<512x384xbf16>, vector<8x384xf32> -> vector<8x384xf32>
    %c0_11 = arith.constant 0 : index
    %c0_12 = arith.constant 0 : index
    %14 = vector.load %arg6[%c0_11, %c0_12] : memref<1x384xf32, #tpu.memory_space<vmem>>, vector<1x384xf32>
    %15 = vector.broadcast %14 : vector<1x384xf32> to vector<8x384xf32>
    %16 = arith.addf %13, %15 : vector<8x384xf32>
    %cst_13 = arith.constant 0.000000e+00 : f32
    %17 = vector.broadcast %cst_13 : f32 to vector<8x384xf32>
    %18 = arith.maximumf %16, %17 : vector<8x384xf32>
    %19 = arith.truncf %18 : vector<8x384xf32> to vector<8x384xbf16>
    %c0_14 = arith.constant 0 : index
    %c0_15 = arith.constant 0 : index
    %20 = vector.load %arg7[%c0_14, %c0_15] : memref<384x4xbf16, #tpu.memory_space<vmem>>, vector<384x4xbf16>
    %cst_16 = arith.constant dense<0.000000e+00> : vector<8x4xf32>
    %21 = tpu.matmul %19, %20, %cst_16 {dimension_numbers = #tpu.dot_dimension_numbers<[1], [0], [0], [1], [0, 0, 1, 1], [], []>} : vector<8x384xbf16>, vector<384x4xbf16>, vector<8x4xf32> -> vector<8x4xf32>
    %c0_17 = arith.constant 0 : index
    %c0_18 = arith.constant 0 : index
    %22 = vector.load %arg8[%c0_17, %c0_18] : memref<1x4xf32, #tpu.memory_space<vmem>>, vector<1x4xf32>
    %23 = vector.broadcast %22 : vector<1x4xf32> to vector<8x4xf32>
    %24 = arith.addf %21, %23 : vector<8x4xf32>
    %25 = math.tanh %24 : vector<8x4xf32>
    %cst_19 = arith.constant 5.000000e-02 : f32
    %26 = vector.broadcast %cst_19 : f32 to vector<8x4xf32>
    %27 = arith.mulf %26, %25 : vector<8x4xf32>
    %28 = arith.addf %27, %0 : vector<8x4xf32>
    %cst_20 = arith.constant -1.000000e+00 : f32
    %cst_21 = arith.constant 1.000000e+00 : f32
    %29 = vector.broadcast %cst_20 : f32 to vector<8x4xf32>
    %30 = arith.maximumf %29, %28 : vector<8x4xf32>
    %31 = vector.broadcast %cst_21 : f32 to vector<8x4xf32>
    %32 = arith.minimumf %31, %30 : vector<8x4xf32>
    %c0_22 = arith.constant 0 : index
    %c0_23 = arith.constant 0 : index
    %33 = vector.load %arg9[%c0_22, %c0_23] : memref<8x4xf32, #tpu.memory_space<vmem>>, vector<8x4xf32>
    tpu.vector_store %arg9[%c0_22, %c0_23], %32 {strides = array<i32>} : memref<8x4xf32, #tpu.memory_space<vmem>>, vector<8x4xf32>,
    return
  }
  func.func @transform_0(%arg0: i32) -> (i32, i32) {
    %c0_i32 = arith.constant 0 : i32
    %c0_i32_0 = arith.constant 0 : i32
    return %arg0, %c0_i32 : i32, i32
  }
  func.func @transform_1(%arg0: i32) -> (i32, i32) {
    %c0_i32 = arith.constant 0 : i32
    %c0_i32_0 = arith.constant 0 : i32
    return %arg0, %c0_i32 : i32, i32
  }
  func.func @transform_2(%arg0: i32) -> (i32, i32) {
    %c0_i32 = arith.constant 0 : i32
    %c0_i32_0 = arith.constant 0 : i32
    %c0_i32_1 = arith.constant 0 : i32
    return %c0_i32, %c0_i32_0 : i32, i32
  }
  func.func @transform_3(%arg0: i32) -> (i32, i32) {
    %c0_i32 = arith.constant 0 : i32
    %c0_i32_0 = arith.constant 0 : i32
    %c0_i32_1 = arith.constant 0 : i32
    return %c0_i32, %c0_i32_0 : i32, i32
  }
  func.func @transform_4(%arg0: i32) -> (i32, i32) {
    %c0_i32 = arith.constant 0 : i32
    %c0_i32_0 = arith.constant 0 : i32
    %c0_i32_1 = arith.constant 0 : i32
    return %c0_i32, %c0_i32_0 : i32, i32
  }
  func.func @transform_5(%arg0: i32) -> (i32, i32) {
    %c0_i32 = arith.constant 0 : i32
    %c0_i32_0 = arith.constant 0 : i32
    %c0_i32_1 = arith.constant 0 : i32
    return %c0_i32, %c0_i32_0 : i32, i32
  }
  func.func @transform_6(%arg0: i32) -> (i32, i32) {
    %c0_i32 = arith.constant 0 : i32
    %c0_i32_0 = arith.constant 0 : i32
    %c0_i32_1 = arith.constant 0 : i32
    return %c0_i32, %c0_i32_0 : i32, i32
  }
  func.func @transform_7(%arg0: i32) -> (i32, i32) {
    %c0_i32 = arith.constant 0 : i32
    %c0_i32_0 = arith.constant 0 : i32
    %c0_i32_1 = arith.constant 0 : i32
    return %c0_i32, %c0_i32_0 : i32, i32
  }
  func.func @transform_8(%arg0: i32) -> (i32, i32) {
    %c0_i32 = arith.constant 0 : i32
    %c0_i32_0 = arith.constant 0 : i32
    return %arg0, %c0_i32 : i32, i32
  }
}

</mosaic_0001>

<bundles_post_ra>
// kernel: tpu_custom_call.1
= control target key start
LH: loop header
LB: loop body
LE: loop exit
PB: predicated region body
PF: predicated region fallthrough
CT: control target
= control target key end

     0   :  { %13 = vsyncpa [#allocation3], 0  ;;  %s2019_s0 = inlined_call_operand.vmem [shape: f32[2,16], index: 0, kind: input, shape index: {}]   ;;  %s2020_s1 = inlined_call_operand.vmem [shape: f32[2,4], index: 1, kind: input, shape index: {}]   ;;  %s2021_s2 = inlined_call_operand.vmem [shape: bf16[20,512], index: 2, kind: input, shape index: {}]   ;;  %s2022_s3 = inlined_call_operand.vmem [shape: f32[1,512], index: 3, kind: input, shape index: {}]   ;;  %s2023_s4 = inlined_call_operand.hbm [shape: bf16[512,384], index: 4, kind: input, shape index: {}]   ;;  %s2024_s5 = inlined_call_operand.vmem [shape: f32[1,384], index: 5, kind: input, shape index: {}]   ;;  %s2025_s6 = inlined_call_operand.vmem [shape: bf16[384,4], index: 6, kind: input, shape index: {}]   ;;  %s2026_s7 = inlined_call_operand.vmem [shape: f32[1,4], index: 7, kind: input, shape index: {}]   ;;  %s2027_s8 = inlined_call_operand.hbm [shape: f32[2,4], index: 8, kind: output, shape index: {}]  }
   0x1   :  { %14 = vsyncpa [#allocation4], 0  ;;  %s1805_s27 = smov [#allocation2]   ;;  %s1757_s9 = scalar_lea.hbm %s2023_s4, 12288 }
   0x2   :  { %s28_s28 = sshll.u32 %s1805_s27, 4  ;;  %p1758_p0 = scmp.ne.s32.totalorder %s2023_s4, %s1757_s9  ;;  %s29_s28 = int_to_ptr.vmem [resolvable:$true] %s28_s28 }
   0x3   :  { %p1761_p1 = scmp.lt.u32.totalorder %s1757_s9, %s2023_s4 }
   0x5   :  { %p1763_p2 = pnand %p1761_p1, %p1758_p0 }
   0x7   :  { %1766 = shalt.err (!%p1763_p2)
}
   0x8   :  { %s1767_s14 = scalar_lea.vmem %s29_s28, 12288  ;;  %p1772_p4 = scmp.lt.s32.totalorder %s29_s28, %s29_s28 }
   0x9   :  { %p1768_p3 = scmp.ne.s32.totalorder %s29_s28, %s1767_s14  ;;  %p1773_p5 = scmp.lt.s32.totalorder %s1767_s14, %s1767_s14 }
   0xb   :  { %p1774_p6 = por %p1773_p5, %p1772_p4 }
   0xd   :  { %p1775_p7 = pnand %p1774_p6, %p1768_p3 }
   0xf   :  { %1778 = shalt.err (!%p1775_p7)
}
  0x10   :  { %s1806_s15 = smov 192   ;;  %s1807_s16 = smov 12  }
  0x11   :  { %34 = dma.hbm_to_vmem [thread:$0]  %s2023_s4, 12288, %s29_s28, [#allocation3], %s1806_s15, %s1806_s15, %s1807_s16  }
  0x12   :  { %1801 = dma.done.wait [#allocation3], 12288  }
  0x13   :  { %1802 = vsyncadd [#allocation3], 4294955008  ;;  %v1808_v0 = vmov 0   ;;  %v45_v1 = vld [vmem:[%s2020_s1] sm:$0xff]  ;;  %s1809_s21 = smov 16   ;;  %vm116_vm0 = vcmask 1041408  }
  0x14   :  { %161 = vmatprep.mubr.bf16.mxu0 %v1808_v0  ;;  %202 = vmatprep.mubr.bf16.mxu1 %v1808_v0  ;;  %v1592_v2 = vld [vmem:[%s2021_s2 + $0x4] ss:$16 sps:$4 sm:$0xff]   ;;  %v1594_v3 = vld [vmem:[%s2021_s2 + $0xc] ss:$16 sps:$4 sm:$0xff]   ;;  %v1596_v4 = vld [vmem:[%s2021_s2] ss:$16 sps:$4 sm:$0xff]  }
  0x15   :  { %48 = vrot.lane.b32.xlu0 %v45_v1, %s1809_s21  ;;  %v1597_v5 = vld [vmem:[%s2021_s2 + $0x8] ss:$16 sps:$4 sm:$0xff]   ;;  %129 = vmatprep.subr.bf16.mxu0 %v1592_v2  ;;  %v58_v6 = vld [vmem:[%s2021_s2 + $0x20] sm:$0x33]  ;;  %vm51_vm1 = vcmask 130048   ;;  %vm112_vm2 = vcmask 162816  }
  0x16   :  { %v59_v7 = vld [vmem:[%s2021_s2 + $0x28] sm:$0x33]  ;;  %170 = vmatprep.subr.bf16.mxu1 %v1594_v3  ;;  %130 = vmatpush1.bf16.msra.mxu0 %v1596_v4  ;;  %v1352_v8 = vcombine.high %v58_v6, %v58_v6  ;;  %v1351_v10 = vcombine.low %v58_v6, %v58_v6  ;;  %v1604_v12 = vld [vmem:[#allocation2 + $0x4] ss:$12 sps:$4 sm:$0xff]   ;;  %v1610_v26 = vld [vmem:[#allocation2 + $0x34] ss:$12 sps:$4 sm:$0xff]   ;;  %v62_v4 = vlaneseq }
  0x17   :  { %v1354_v9 = vcombine.high %v59_v7, %v59_v7  ;;  %171 = vmatpush1.bf16.msra.mxu1 %v1597_v5  ;;  %v1353_v11 = vcombine.low %v59_v7, %v59_v7  ;;  %v1629_v15 = vld [vmem:[#allocation2 + $0xc8] ss:$12 sps:$4 sm:$0xff]   ;;  %v46_v16 = vld [vmem:[%s2019_s0] sm:$0xff]  ;;  %v1608_v28 = vld [vmem:[#allocation2 + $0x30] ss:$12 sps:$4 sm:$0xff]   ;;  %vm1811_vm3 = vmmov 0  }
  0x18   :  { %1355 = vmatprep.subr.msk.bf16.mxu0 %vm116_vm0, %v1352_v8  ;;  %v118_v13 = vsel %vm116_vm0, %v1351_v10, 0  ;;  %v1602_v19 = vld [vmem:[#allocation2] ss:$12 sps:$4 sm:$0xff]   ;;  %v1630_v20 = vld [vmem:[#allocation2 + $0x8] ss:$12 sps:$4 sm:$0xff]   ;;  %v1896_v5 = vshrl.u32 %v62_v4, 7 }
  0x19   :  { %1357 = vmatprep.subr.msk.bf16.mxu1 %vm116_vm0, %v1354_v9  ;;  %v124_v14 = vsel %vm116_vm0, %v1353_v11, 0  ;;  %v1607_v22 = vld [vmem:[#allocation2 + $0x1c] ss:$12 sps:$4 sm:$0xff]   ;;  %v1634_v23 = vld [vmem:[#allocation2 + $0xe0] ss:$12 sps:$4 sm:$0xff]   ;;  %vm1328_vm4 = vcmask 31744  }
  0x1a   :  { %132 = vmatpush1.bf16.msra.mxu0 %v118_v13  ;;  %v1605_v24 = vld [vmem:[#allocation2 + $0x18] ss:$12 sps:$4 sm:$0xff]   ;;  %v1635_v25 = vld [vmem:[#allocation2 + $0x20] ss:$12 sps:$4 sm:$0xff]   ;;  %v1644_v31 = vld [vmem:[#allocation2 + $0x110] ss:$12 sps:$4 sm:$0xff]  }
  0x1b   :  { %173 = vmatpush1.bf16.msra.mxu1 %v124_v14  ;;  %876 = vmatprep.subr.bf16.mxu0 %v1604_v12  ;;  %v1639_v27 = vld [vmem:[#allocation2 + $0xf8] ss:$12 sps:$4 sm:$0xff]   ;;  %v1611_v32 = vld [vmem:[#allocation2 + $0x48] ss:$12 sps:$4 sm:$0xff]   ;;  %v1645_v33 = vld [vmem:[#allocation2 + $0x50] ss:$12 sps:$4 sm:$0xff]  }
  0x1c   :  { %1481 = vmatprep.subr.bf16.mxu1 %v1629_v15  ;;  %v1640_v29 = vld [vmem:[#allocation2 + $0x38] ss:$12 sps:$4 sm:$0xff]   ;;  %v1649_v35 = vld [vmem:[#allocation2 + $0x128] ss:$12 sps:$4 sm:$0xff]   ;;  %v1614_v36 = vld [vmem:[#allocation2 + $0x60] ss:$12 sps:$4 sm:$0xff]  }
  0x1d   :  { %v1613_v30 = vld [vmem:[#allocation2 + $0x4c] ss:$12 sps:$4 sm:$0xff]   ;;  %v1616_v34 = vld [vmem:[#allocation2 + $0x64] ss:$12 sps:$4 sm:$0xff]   ;;  %v1650_v37 = vld [vmem:[#allocation2 + $0x68] ss:$12 sps:$4 sm:$0xff]  }
  0x1e   :  { %v1619_v38 = vld [vmem:[#allocation2 + $0x7c] ss:$12 sps:$4 sm:$0xff]   ;;  %v1654_v39 = vld [vmem:[#allocation2 + $0x140] ss:$12 sps:$4 sm:$0xff]   ;;  %v1617_v40 = vld [vmem:[#allocation2 + $0x78] ss:$12 sps:$4 sm:$0xff]  }
  0x1f   :  { %v1655_v41 = vld [vmem:[#allocation2 + $0x80] ss:$12 sps:$4 sm:$0xff]   ;;  %v1620_v43 = vld [vmem:[#allocation2 + $0x90] ss:$12 sps:$4 sm:$0xff]   ;;  %v1623_v45 = vld [vmem:[#allocation2 + $0xa8] ss:$12 sps:$4 sm:$0xff]  }
  0x20   :  { %v1622_v42 = vld [vmem:[#allocation2 + $0x94] ss:$12 sps:$4 sm:$0xff]   ;;  %v1625_v44 = vld [vmem:[#allocation2 + $0xac] ss:$12 sps:$4 sm:$0xff]   ;;  %v1628_v46 = vld [vmem:[#allocation2 + $0xc4] ss:$12 sps:$4 sm:$0xff]  }
  0x21   :  { %v1626_v47 = vld [vmem:[#allocation2 + $0xc0] ss:$12 sps:$4 sm:$0xff]   ;;  %v1633_v48 = vld [vmem:[#allocation2 + $0xdc] ss:$12 sps:$4 sm:$0xff]   ;;  %v1631_v49 = vld [vmem:[#allocation2 + $0xd8] ss:$12 sps:$4 sm:$0xff]  }
  0x22   :  { %v1638_v50 = vld [vmem:[#allocation2 + $0xf4] ss:$12 sps:$4 sm:$0xff]   ;;  %v1636_v51 = vld [vmem:[#allocation2 + $0xf0] ss:$12 sps:$4 sm:$0xff]   ;;  %v1643_v52 = vld [vmem:[#allocation2 + $0x10c] ss:$12 sps:$4 sm:$0xff]  }
  0x23   :  { %v1641_v53 = vld [vmem:[#allocation2 + $0x108] ss:$12 sps:$4 sm:$0xff]   ;;  %v1648_v54 = vld [vmem:[#allocation2 + $0x124] ss:$12 sps:$4 sm:$0xff]   ;;  %v1646_v55 = vld [vmem:[#allocation2 + $0x120] ss:$12 sps:$4 sm:$0xff]  }
  0x24   :  { %v1653_v56 = vld [vmem:[#allocation2 + $0x13c] ss:$12 sps:$4 sm:$0xff]   ;;  %v1651_v57 = vld [vmem:[#allocation2 + $0x138] ss:$12 sps:$4 sm:$0xff]   ;;  %v1658_v58 = vld [vmem:[#allocation2 + $0x154] ss:$12 sps:$4 sm:$0xff]  }
  0x25   :  { %v1659_v59 = vld [vmem:[#allocation2 + $0x158] ss:$12 sps:$4 sm:$0xff]   ;;  %v1656_v60 = vld [vmem:[#allocation2 + $0x150] ss:$12 sps:$4 sm:$0xff]   ;;  %v1661_v0 = vld [vmem:[#allocation2 + $0x168] ss:$12 sps:$4 sm:$0xff]  }
  0x26   :  { %v1660_v61 = vld [vmem:[#allocation2 + $0x98] ss:$12 sps:$4 sm:$0xff]   ;;  %v1664_v63 = vld [vmem:[#allocation2 + $0x170] ss:$12 sps:$4 sm:$0xff]   ;;  %v1669_v3 = vld [vmem:[#allocation2 + $0x248] ss:$12 sps:$4 sm:$0xff]  }
  0x27   :  { %v1663_v62 = vld [vmem:[#allocation2 + $0x16c] ss:$12 sps:$4 sm:$0xff]   ;;  %v1665_v1 = vld [vmem:[#allocation2 + $0xb0] ss:$12 sps:$4 sm:$0xff]   ;;  %v64_v6 = vsub.s32 0, %v1896_v5  ;;  %v68_v8 = vsub.s32 1, %v1896_v5 }
  0x28   :  { %v1668_v2 = vld [vmem:[#allocation2 + $0x184] ss:$12 sps:$4 sm:$0xff]   ;;  %v1902_v7 = vld [vmem:[%s2022_s3] sm:$0xf]  ;;  %v76_v9 = vsub.s32 3, %v1896_v5 }
  0x29   :  { %v65_v10 = vrot.slane %v1902_v7, %v64_v6  ;;  %v69_v11 = vrot.slane %v1902_v7, %v68_v8  ;;  %v1709_v4 = vld [vmem:[#allocation2 + $0x258] ss:$12 sps:$4 sm:$0xff]  }
  0x2a   :  { %v77_v12 = vrot.slane %v1902_v7, %v76_v9  ;;  %v1712_v9 = vld [vmem:[#allocation2 + $0x270] ss:$12 sps:$4 sm:$0xff]  }
  0x87   :  { %v49_v17 = vpop.permute.xlu0 %48 }
  0x88   :  { %v52_v18 = vsel %vm51_vm1, %v46_v16, %v49_v17 }
  0x89   :  { %v53_v21 = vpack.c.bf16 %v52_v18, %v52_v18 }
  0x8b   :  { %1356 = vmatmul.mubr.msk.bf16.vlgmr.msra.gmra.mrb[0].mxu0 %vm112_vm2, %v53_v21  ;;  %1358 = vmatmul.mubr.msk.bf16.vlgmr.msra.gmra.mrb[0].mxu1 %vm112_vm2, %v53_v21 }
  0x8c   :  { %877 = vmatpush1.bf16.msra.mxu0 %v1602_v19  ;;  %1482 = vmatpush3.bf16.msra.mxu1 %v1630_v20 }
  0x8d   :  { %878 = vmatprep.subr.bf16.mxu0 %v1607_v22  ;;  %1483 = vmatprep.subr.bf16.mxu1 %v1634_v23 }
  0x90   :  { %879 = vmatpush1.bf16.msra.mxu0 %v1605_v24  ;;  %1484 = vmatpush3.bf16.msra.mxu1 %v1635_v25 }
  0x91   :  { %880 = vmatprep.subr.bf16.mxu0 %v1610_v26  ;;  %1485 = vmatprep.subr.bf16.mxu1 %v1639_v27 }
  0x94   :  { %881 = vmatpush1.bf16.msra.mxu0 %v1608_v28  ;;  %1486 = vmatpush3.bf16.msra.mxu1 %v1640_v29  ;;  %v1666_v28 = vld [vmem:[#allocation2 + $0x180] ss:$12 sps:$4 sm:$0xff]   ;;  %v1670_v29 = vld [vmem:[#allocation2 + $0x188] ss:$12 sps:$4 sm:$0xff]  }
  0x95   :  { %882 = vmatprep.subr.bf16.mxu0 %v1613_v30  ;;  %1487 = vmatprep.subr.bf16.mxu1 %v1644_v31  ;;  %v1673_v31 = vld [vmem:[#allocation2 + $0x19c] ss:$12 sps:$4 sm:$0xff]  }
  0x98   :  { %883 = vmatpush1.bf16.msra.mxu0 %v1611_v32  ;;  %1488 = vmatpush3.bf16.msra.mxu1 %v1645_v33  ;;  %v1674_v32 = vld [vmem:[#allocation2 + $0x260] ss:$12 sps:$4 sm:$0xff]  }
  0x99   :  { %884 = vmatprep.subr.bf16.mxu0 %v1616_v34  ;;  %1489 = vmatprep.subr.bf16.mxu1 %v1649_v35  ;;  %v1671_v34 = vld [vmem:[#allocation2 + $0x198] ss:$12 sps:$4 sm:$0xff]   ;;  %v1675_v35 = vld [vmem:[#allocation2 + $0x1a0] ss:$12 sps:$4 sm:$0xff]  }
  0x9c   :  { %885 = vmatpush1.bf16.msra.mxu0 %v1614_v36  ;;  %1490 = vmatpush3.bf16.msra.mxu1 %v1650_v37  ;;  %v1678_v36 = vld [vmem:[#allocation2 + $0x1b4] ss:$12 sps:$4 sm:$0xff]   ;;  %v1679_v37 = vld [vmem:[#allocation2 + $0x278] ss:$12 sps:$4 sm:$0xff]  }
  0x9d   :  { %886 = vmatprep.subr.bf16.mxu0 %v1619_v38  ;;  %1491 = vmatprep.subr.bf16.mxu1 %v1654_v39  ;;  %v1676_v38 = vld [vmem:[#allocation2 + $0x1b0] ss:$12 sps:$4 sm:$0xff]   ;;  %v1680_v39 = vld [vmem:[#allocation2 + $0x1b8] ss:$12 sps:$4 sm:$0xff]  }
  0xa0   :  { %887 = vmatpush1.bf16.msra.mxu0 %v1617_v40  ;;  %1492 = vmatpush3.bf16.msra.mxu1 %v1655_v41  ;;  %v1683_v40 = vld [vmem:[#allocation2 + $0x1cc] ss:$12 sps:$4 sm:$0xff]   ;;  %v1684_v41 = vld [vmem:[#allocation2 + $0x290] ss:$12 sps:$4 sm:$0xff]  }
  0xa1   :  { %888 = vmatprep.subr.bf16.mxu0 %v1622_v42  ;;  %1493 = vmatprep.subr.bf16.mxu1 %v1659_v59  ;;  %v1681_v42 = vld [vmem:[#allocation2 + $0x1c8] ss:$12 sps:$4 sm:$0xff]   ;;  %v1703_v59 = vld [vmem:[#allocation2 + $0x22c] ss:$12 sps:$4 sm:$0xff]  }
  0xa4   :  { %889 = vmatpush1.bf16.msra.mxu0 %v1620_v43  ;;  %1494 = vmatpush3.bf16.msra.mxu1 %v1660_v61  ;;  %v1685_v43 = vld [vmem:[#allocation2 + $0x1d0] ss:$12 sps:$4 sm:$0xff]   ;;  %v1701_v61 = vld [vmem:[#allocation2 + $0x228] ss:$12 sps:$4 sm:$0xff]  }
  0xa5   :  { %890 = vmatprep.subr.bf16.mxu0 %v1625_v44  ;;  %1495 = vmatprep.subr.bf16.mxu1 %v1664_v63  ;;  %v1688_v44 = vld [vmem:[#allocation2 + $0x1e4] ss:$12 sps:$4 sm:$0xff]  }
  0xa8   :  { %891 = vmatpush1.bf16.msra.mxu0 %v1623_v45  ;;  %1496 = vmatpush3.bf16.msra.mxu1 %v1665_v1  ;;  %v1689_v45 = vld [vmem:[#allocation2 + $0x2a8] ss:$12 sps:$4 sm:$0xff]   ;;  %v1706_v1 = vld [vmem:[#allocation2 + $0x240] ss:$12 sps:$4 sm:$0xff]  }
  0xa9   :  { %892 = vmatprep.subr.bf16.mxu0 %v1628_v46  ;;  %1503 = vmatprep.subr.bf16.mxu1 %v1669_v3  ;;  %v1686_v46 = vld [vmem:[#allocation2 + $0x1e0] ss:$12 sps:$4 sm:$0xff]   ;;  %v1711_v3 = vld [vmem:[#allocation2 + $0x25c] ss:$12 sps:$4 sm:$0xff]  }
  0xac   :  { %893 = vmatpush1.bf16.msra.mxu0 %v1626_v47  ;;  %v1690_v47 = vld [vmem:[#allocation2 + $0x1e8] ss:$12 sps:$4 sm:$0xff]  }
  0xad   :  { %894 = vmatprep.subr.bf16.mxu0 %v1633_v48  ;;  %v72_v48 = vsub.s32 2, %v1896_v5  ;;  %v1747_v5 = vld [vmem:[%s2025_s6 + $0x88] sm:$0xff]  }
  0xb0   :  { %895 = vmatpush1.bf16.msra.mxu0 %v1631_v49  ;;  %v1693_v49 = vld [vmem:[#allocation2 + $0x1fc] ss:$12 sps:$4 sm:$0xff]  }
  0xb1   :  { %896 = vmatprep.subr.bf16.mxu0 %v1638_v50  ;;  %v1694_v50 = vld [vmem:[#allocation2 + $0x2c0] ss:$12 sps:$4 sm:$0xff]  }
  0xb4   :  { %897 = vmatpush1.bf16.msra.mxu0 %v1636_v51  ;;  %v1691_v51 = vld [vmem:[#allocation2 + $0x1f8] ss:$12 sps:$4 sm:$0xff]  }
  0xb5   :  { %898 = vmatprep.subr.bf16.mxu0 %v1643_v52  ;;  %v1695_v52 = vld [vmem:[#allocation2 + $0x200] ss:$12 sps:$4 sm:$0xff]  }
  0xb8   :  { %899 = vmatpush1.bf16.msra.mxu0 %v1641_v53  ;;  %v73_v53 = vrot.slane %v1902_v7, %v72_v48  ;;  %v1714_v7 = vld [vmem:[#allocation2 + $0x274] ss:$12 sps:$4 sm:$0xff]  }
  0xb9   :  { %900 = vmatprep.subr.bf16.mxu0 %v1648_v54  ;;  %v1698_v54 = vld [vmem:[#allocation2 + $0x214] ss:$12 sps:$4 sm:$0xff]  }
  0xbc   :  { %901 = vmatpush1.bf16.msra.mxu0 %v1646_v55  ;;  %v1699_v55 = vld [vmem:[#allocation2 + $0x2d8] ss:$12 sps:$4 sm:$0xff]  }
  0xbd   :  { %902 = vmatprep.subr.bf16.mxu0 %v1653_v56  ;;  %v1696_v56 = vld [vmem:[#allocation2 + $0x210] ss:$12 sps:$4 sm:$0xff]  }
  0xc0   :  { %903 = vmatpush1.bf16.msra.mxu0 %v1651_v57  ;;  %v1700_v57 = vld [vmem:[#allocation2 + $0x218] ss:$12 sps:$4 sm:$0xff]  }
  0xc1   :  { %904 = vmatprep.subr.bf16.mxu0 %v1658_v58 }
  0xc4   :  { %905 = vmatpush1.bf16.msra.mxu0 %v1656_v60  ;;  %v1704_v60 = vld [vmem:[#allocation2 + $0x2f0] ss:$12 sps:$4 sm:$0xff]  }
  0xc5   :  { %906 = vmatprep.subr.bf16.mxu0 %v1663_v62  ;;  %v1705_v62 = vld [vmem:[#allocation2 + $0x230] ss:$12 sps:$4 sm:$0xff]  }
  0xc8   :  { %907 = vmatpush1.bf16.msra.mxu0 %v1661_v0  ;;  %v1708_v0 = vld [vmem:[#allocation2 + $0x244] ss:$12 sps:$4 sm:$0xff]  }
  0xc9   :  { %917 = vmatprep.subr.bf16.mxu0 %v1668_v2 }
 0x15e   :  { %v163_v13 = vpop.f32.mrb[0].mxu0  ;;  %v1913_v14 = vpop.f32.mrb[0].mxu1 }
 0x15f   :  { %v164_v15 = vadd.f32 %v163_v13, %v65_v10  ;;  %v165_v16 = vpop.f32.mrb[1].mxu0  ;;  %v206_v17 = vpop.f32.mrb[1].mxu1  ;;  %v205_v58 = vadd.f32 %v1913_v14, %v73_v53  ;;  %v1717_v10 = vld [vmem:[#allocation2 + $0x28c] ss:$12 sps:$4 sm:$0xff]   ;;  %v1723_v14 = vld [vmem:[#allocation2 + $0x2bc] ss:$12 sps:$4 sm:$0xff]  }
 0x160   :  { %v166_v18 = vadd.f32 %v165_v16, %v69_v11  ;;  %v207_v19 = vadd.f32 %v206_v17, %v77_v12  ;;  %v167_v20 = vpop.f32.mrb[2].mxu0  ;;  %v208_v21 = vpop.f32.mrb[2].mxu1  ;;  %v1715_v11 = vld [vmem:[#allocation2 + $0x288] ss:$12 sps:$4 sm:$0xff]   ;;  %v1720_v12 = vld [vmem:[#allocation2 + $0x2a4] ss:$12 sps:$4 sm:$0xff]  }
 0x161   :  { %v211_v22 = vmax.f32 %v164_v15, 0.0  ;;  %v168_v23 = vpop.f32.mrb[3].mxu0  ;;  %v209_v24 = vpop.f32.mrb[3].mxu1  ;;  %v213_v63 = vmax.f32 %v205_v58, 0.0  ;;  %v1718_v13 = vld [vmem:[#allocation2 + $0x2a0] ss:$12 sps:$4 sm:$0xff]  }
 0x162   :  { %v212_v25 = vmax.f32 %v166_v18, 0.0  ;;  %v214_v26 = vmax.f32 %v207_v19, 0.0  ;;  %v1721_v15 = vld [vmem:[#allocation2 + $0x2b8] ss:$12 sps:$4 sm:$0xff]   ;;  %v1726_v16 = vld [vmem:[#allocation2 + $0x2d4] ss:$12 sps:$4 sm:$0xff]  }
 0x163   :  { %v215_v30 = vpack.c.bf16 %v211_v22, %v211_v22  ;;  %v217_v2 = vpack.c.bf16 %v213_v63, %v213_v63  ;;  %v1724_v17 = vld [vmem:[#allocation2 + $0x2d0] ss:$12 sps:$4 sm:$0xff]   ;;  %v1729_v18 = vld [vmem:[#allocation2 + $0x2ec] ss:$12 sps:$4 sm:$0xff]   ;;  %v1727_v19 = vld [vmem:[#allocation2 + $0x2e8] ss:$12 sps:$4 sm:$0xff]  }
 0x164   :  { %v216_v27 = vpack.c.bf16 %v212_v25, %v212_v25  ;;  %v218_v33 = vpack.c.bf16 %v214_v26, %v214_v26  ;;  %v1730_v20 = vld [vmem:[%s2025_s6 + $0x40] sm:$0xff]   ;;  %v1732_v22 = vld [vmem:[%s2025_s6 + $0x48] sm:$0xff]   ;;  %v1734_v24 = vld [vmem:[%s2025_s6 + $0x50] sm:$0xff]  }
 0x165   :  { %v1731_v21 = vld [vmem:[%s2025_s6] sm:$0xff]   ;;  %v1733_v23 = vld [vmem:[%s2025_s6 + $0x8] sm:$0xff]   ;;  %v1735_v25 = vld [vmem:[%s2025_s6 + $0x10] sm:$0xff]  }
 0x166   :  { %908 = vmatprep.mubr.bf16.mxu0 %v216_v27  ;;  %990 = vmatprep.mubr.bf16.mxu1 %v216_v27  ;;  %v1736_v26 = vld [vmem:[%s2025_s6 + $0x58] sm:$0xff]  }
 0x167   :  { %909 = vmatmul.mubr.bf16.vlgmr.msra.gmra.mrb[4].mxu0 %v215_v30  ;;  %991 = vmatmul.mubr.bf16.vlgmr.msra.gmra.mrb[4].mxu1 %v215_v30  ;;  %v1737_v27 = vld [vmem:[%s2025_s6 + $0x18] sm:$0xff]   ;;  %v1740_v30 = vld [vmem:[%s2025_s6 + $0x68] sm:$0xff]  }
 0x168   :  { %918 = vmatpush1.bf16.msra.mxu0 %v1666_v28  ;;  %1504 = vmatpush3.bf16.msra.mxu1 %v1670_v29  ;;  %v1738_v28 = vld [vmem:[%s2025_s6 + $0x60] sm:$0xff]  }
 0x169   :  { %949 = vmatprep.mubr.bf16.mxu0 %v218_v33  ;;  %1030 = vmatprep.mubr.bf16.mxu1 %v218_v33  ;;  %v1739_v29 = vld [vmem:[%s2025_s6 + $0x20] sm:$0xff]   ;;  %v1743_v33 = vld [vmem:[%s2025_s6 + $0x30] sm:$0xff]  }
 0x16a   :  { %919 = vmatprep.subr.bf16.mxu0 %v1673_v31  ;;  %1505 = vmatprep.subr.bf16.mxu1 %v1674_v32  ;;  %v1741_v31 = vld [vmem:[%s2025_s6 + $0x28] sm:$0xff]   ;;  %v1742_v32 = vld [vmem:[%s2025_s6 + $0x70] sm:$0xff]  }
 0x16c   :  { %920 = vmatpush1.bf16.msra.mxu0 %v1671_v34  ;;  %1506 = vmatpush3.bf16.msra.mxu1 %v1675_v35  ;;  %v1744_v34 = vld [vmem:[%s2025_s6 + $0x78] sm:$0xff]  }
 0x16d   :  { %921 = vmatprep.subr.bf16.mxu0 %v1678_v36  ;;  %1507 = vmatprep.subr.bf16.mxu1 %v1679_v37  ;;  %v1745_v35 = vld [vmem:[%s2025_s6 + $0x38] sm:$0xff]   ;;  %v1810_v36 = vmov 0.0  }
 0x170   :  { %922 = vmatpush1.bf16.msra.mxu0 %v1676_v38  ;;  %1508 = vmatpush3.bf16.msra.mxu1 %v1680_v39 }
 0x171   :  { %923 = vmatprep.subr.bf16.mxu0 %v1683_v40  ;;  %1509 = vmatprep.subr.bf16.mxu1 %v1684_v41 }
 0x174   :  { %924 = vmatpush1.bf16.msra.mxu0 %v1681_v42  ;;  %1510 = vmatpush3.bf16.msra.mxu1 %v1685_v43  ;;  %v347_v42 = vld [vmem:[%s2024_s5] sm:$0x7] }
 0x175   :  { %925 = vmatprep.subr.bf16.mxu0 %v1688_v44  ;;  %1511 = vmatprep.subr.bf16.mxu1 %v1689_v45  ;;  %v360_v43 = vrot.slane %v347_v42, %v72_v48  ;;  %v356_v53 = vrot.slane %v347_v42, %v68_v8  ;;  %v1749_v8 = vld [vmem:[%s2025_s6 + $0x98] sm:$0xff]  }
 0x178   :  { %926 = vmatpush1.bf16.msra.mxu0 %v1686_v46  ;;  %1512 = vmatpush3.bf16.msra.mxu1 %v1690_v47 }
 0x179   :  { %927 = vmatprep.subr.bf16.mxu0 %v1693_v49  ;;  %1513 = vmatprep.subr.bf16.mxu1 %v1694_v50 }
 0x17c   :  { %928 = vmatpush1.bf16.msra.mxu0 %v1691_v51  ;;  %1514 = vmatpush3.bf16.msra.mxu1 %v1695_v52  ;;  %v352_v52 = vrot.slane %v347_v42, %v64_v6  ;;  %v1748_v6 = vld [vmem:[%s2025_s6 + $0x90] sm:$0xff]  }
 0x17d   :  { %929 = vmatprep.subr.bf16.mxu0 %v1698_v54  ;;  %1515 = vmatprep.subr.bf16.mxu1 %v1699_v55 }
 0x180   :  { %930 = vmatpush1.bf16.msra.mxu0 %v1696_v56  ;;  %1516 = vmatpush3.bf16.msra.mxu1 %v1700_v57 }
 0x181   :  { %931 = vmatprep.subr.bf16.mxu0 %v1703_v59  ;;  %1517 = vmatprep.subr.bf16.mxu1 %v1704_v60 }
 0x184   :  { %932 = vmatpush1.bf16.msra.mxu0 %v1701_v61  ;;  %1518 = vmatpush3.bf16.msra.mxu1 %v1705_v62  ;;  %v1746_v62 = vld [vmem:[%s2025_s6 + $0x80] sm:$0xff]  }
 0x185   :  { %933 = vmatprep.subr.bf16.mxu0 %v1708_v0  ;;  %1525 = vmatprep.subr.bf16.mxu1 %v1730_v20  ;;  %v1750_v0 = vld [vmem:[%s2025_s6 + $0xa0] sm:$0xff]  }
 0x187   :  { %1031 = vmatmul.mubr.bf16.vlgmr.msra.gmra.mrb[8].mxu1 %v217_v2 }
 0x188   :  { %934 = vmatpush1.bf16.msra.mxu0 %v1706_v1  ;;  %1526 = vmatpush3.bf16.msra.mxu1 %v1731_v21  ;;  %v1751_v1 = vld [vmem:[%s2025_s6 + $0xa8] sm:$0xff]  }
 0x189   :  { %935 = vmatprep.subr.bf16.mxu0 %v1711_v3  ;;  %1527 = vmatprep.subr.bf16.mxu1 %v1732_v22  ;;  %v1753_v3 = vld [vmem:[%s2025_s6 + $0xb8] sm:$0xff]  }
 0x18c   :  { %936 = vmatpush1.bf16.msra.mxu0 %v1709_v4  ;;  %1528 = vmatpush3.bf16.msra.mxu1 %v1733_v23  ;;  %v1756_v23 = vld [vmem:[%s2020_s1] sm:$0xff] }
 0x18d   :  { %937 = vmatprep.subr.bf16.mxu0 %v1714_v7  ;;  %1529 = vmatprep.subr.bf16.mxu1 %v1734_v24 }
 0x190   :  { %938 = vmatpush1.bf16.msra.mxu0 %v1712_v9  ;;  %1530 = vmatpush3.bf16.msra.mxu1 %v1735_v25 }
 0x191   :  { %939 = vmatprep.subr.bf16.mxu0 %v1717_v10  ;;  %1531 = vmatprep.subr.bf16.mxu1 %v1736_v26 }
 0x194   :  { %940 = vmatpush1.bf16.msra.mxu0 %v1715_v11  ;;  %1532 = vmatpush3.bf16.msra.mxu1 %v1737_v27 }
 0x195   :  { %941 = vmatprep.subr.bf16.mxu0 %v1720_v12  ;;  %1533 = vmatprep.subr.bf16.mxu1 %v1738_v28 }
 0x198   :  { %942 = vmatpush1.bf16.msra.mxu0 %v1718_v13  ;;  %1534 = vmatpush3.bf16.msra.mxu1 %v1739_v29 }
 0x199   :  { %943 = vmatprep.subr.bf16.mxu0 %v1723_v14  ;;  %1535 = vmatprep.subr.bf16.mxu1 %v1740_v30  ;;  %v1455_v14 = vld [vmem:[%s2026_s7] ss:$0 sm:$0xff] }
 0x19c   :  { %944 = vmatpush1.bf16.msra.mxu0 %v1721_v15  ;;  %1536 = vmatpush3.bf16.msra.mxu1 %v1741_v31 }
 0x19d   :  { %945 = vmatprep.subr.bf16.mxu0 %v1726_v16  ;;  %1537 = vmatprep.subr.bf16.mxu1 %v1742_v32 }
 0x1a0   :  { %946 = vmatpush1.bf16.msra.mxu0 %v1724_v17  ;;  %1538 = vmatpush3.bf16.msra.mxu1 %v1743_v33 }
 0x1a1   :  { %947 = vmatprep.subr.bf16.mxu0 %v1729_v18  ;;  %1539 = vmatprep.subr.bf16.mxu1 %v1744_v34 }
 0x1a4   :  { %948 = vmatpush1.bf16.msra.mxu0 %v1727_v19  ;;  %1540 = vmatpush3.bf16.msra.mxu1 %v1745_v35 }
 0x1a5   :  { %1556 = vmatprep.subr.bf16.mxu1 %v1810_v36 }
 0x1a7   :  { %950 = vmatmul.mubr.bf16.vlgmr.msra.gmra.mrb[4].mxu0 %v217_v2  ;;  %v1752_v2 = vld [vmem:[%s2025_s6 + $0xb0] sm:$0xff]  }
 0x23a   :  { %v1497_v37 = vpop.f32.mrb[4].mxu1 }
 0x23b   :  { %v1498_v38 = vpop.f32.mrb[5].mxu1 }
 0x23c   :  { %v1499_v39 = vadd.f32 %v1498_v38, %v1497_v37  ;;  %v1500_v40 = vpop.f32.mrb[6].mxu1 }
 0x23d   :  { %v1501_v41 = vpop.f32.mrb[7].mxu1 }
 0x23e   :  { %v993_v46 = vadd.f32 %v1499_v39, %v360_v43 }
 0x25a   :  { %v1519_v44 = vpop.f32.mrb[8].mxu1 }
 0x25b   :  { %v1520_v45 = vpop.f32.mrb[9].mxu1 }
 0x25c   :  { %v1521_v47 = vadd.f32 %v1520_v45, %v1519_v44  ;;  %v1522_v49 = vpop.f32.mrb[10].mxu1 }
 0x25d   :  { %v1523_v50 = vpop.f32.mrb[11].mxu1 }
 0x25e   :  { %v1033_v51 = vadd.f32 %v1521_v47, %v993_v46 }
 0x260   :  { %v1040_v4 = vmax.f32 %v1033_v51, 0.0 }
 0x262   :  { %v1043_v7 = vpack.c.bf16 %v1040_v4, %v1040_v4 }
 0x27a   :  { %v951_v54 = vpop.f32.mrb[4].mxu0 }
 0x27b   :  { %v1576_v55 = vadd.f32 %v951_v54, %v352_v52  ;;  %v953_v56 = vpop.f32.mrb[5].mxu0 }
 0x27c   :  { %v1577_v57 = vadd.f32 %v953_v56, %v356_v53  ;;  %v955_v58 = vpop.f32.mrb[6].mxu0 }
 0x27d   :  { %v1038_v59 = vmax.f32 %v1576_v55, 0.0  ;;  %v956_v48 = vpop.f32.mrb[7].mxu0 }
 0x27e   :  { %v1039_v60 = vmax.f32 %v1577_v57, 0.0 }
 0x27f   :  { %v1041_v63 = vpack.c.bf16 %v1038_v59, %v1038_v59 }
 0x280   :  { %v1042_v61 = vpack.c.bf16 %v1039_v60, %v1039_v60 }
 0x282   :  { %1275 = vmatprep.mubr.bf16.mxu1 %v1042_v61 }
 0x283   :  { %1276 = vmatmul.mubr.bf16.vlgmr.msra.gmra.mrb[12].mxu1 %v1041_v63 }
 0x284   :  { %1557 = vmatpush3.bf16.msra.mxu1 %v1746_v62  ;;  %1572 = vmatprep.mubr.msk.bf16.mxu1 %vm1811_vm3, %v1810_v36 }
 0x285   :  { %1558 = vmatprep.subr.bf16.mxu1 %v1810_v36 }
 0x288   :  { %1559 = vmatpush3.bf16.msra.mxu1 %v1747_v5 }
 0x289   :  { %1560 = vmatprep.subr.bf16.mxu1 %v1810_v36 }
 0x28c   :  { %1561 = vmatpush3.bf16.msra.mxu1 %v1748_v6 }
 0x28d   :  { %1562 = vmatprep.subr.bf16.mxu1 %v1810_v36 }
 0x290   :  { %1563 = vmatpush3.bf16.msra.mxu1 %v1749_v8 }
 0x291   :  { %1564 = vmatprep.subr.bf16.mxu1 %v1810_v36 }
 0x294   :  { %1565 = vmatpush3.bf16.msra.mxu1 %v1750_v0 }
 0x295   :  { %1566 = vmatprep.subr.bf16.mxu1 %v1810_v36 }
 0x298   :  { %1567 = vmatpush3.bf16.msra.mxu1 %v1751_v1 }
 0x299   :  { %1568 = vmatprep.subr.bf16.mxu1 %v1810_v36 }
 0x29c   :  { %1569 = vmatpush3.bf16.msra.mxu1 %v1752_v2 }
 0x29d   :  { %1570 = vmatprep.subr.bf16.mxu1 %v1810_v36 }
 0x2a0   :  { %1571 = vmatpush3.bf16.msra.mxu1 %v1753_v3 }
 0x2a3   :  { %1573 = vmatmul.mubr.bf16.vlgmr.msra.gmra.mrb[16].mxu1 %v1043_v7 }
 0x356   :  { %v1541_v9 = vpop.f32.mrb[12].mxu1 }
 0x357   :  { %v1542_v10 = vpop.f32.mrb[13].mxu1 }
 0x358   :  { %v1543_v11 = vadd.f32 %v1542_v10, %v1541_v9  ;;  %v1544_v12 = vpop.f32.mrb[14].mxu1 }
 0x359   :  { %v1545_v13 = vpop.f32.mrb[15].mxu1 }
 0x35a   :  { %v1278_v15 = vadd.f32 %v1543_v11, %v1455_v14 }
 0x376   :  { %v1317_v16 = vpop.f32.mrb[16].mxu1 }
 0x377   :  { %v1318_v17 = vadd.f32 %v1317_v16, %v1278_v15  ;;  %v1574_v18 = vpop.f32.mrb[17].mxu1 }
 0x378   :  { %v1320_v19 = vpop.f32.mrb[18].mxu1 }
 0x379   :  { %1754 = vtanh.f32 %v1318_v17  ;;  %v1575_v20 = vpop.f32.mrb[19].mxu1 }
 0x383   :  { %v1755_v21 = vpop.eup %1754 }
 0x384   :  { %v1324_v22 = vmul.f32 0.05, %v1755_v21 }
 0x386   :  { %v1325_v24 = vadd.f32 %v1756_v23, %v1324_v22 }
 0x388   :  { %v1480_v25 = vclamps-f32 %v1325_v24, 1.0 }
 0x38a   :  { %1329 = vst.msk [vmem:[#allocation5] sm:$0xff] %vm1328_vm4, %v1480_v25 }
 0x38b   :  { %1334 = vsyncadd [#allocation4], 96  ;;  %s1812_s3 = smov [#allocation5]  }
 0x38c   :  { %s1335_s7 = sshll.u32 %s1812_s3, 4  ;;  %s1336_s7 = int_to_ptr.vmem [resolvable:$true] %s1335_s7 }
 0x38d   :  { %s1779_s13 = scalar_lea.vmem %s1336_s7, 32  ;;  %s1783_s14 = scalar_lea.vmem %s1336_s7, 128 }
 0x38e   :  { %p1780_p8 = scmp.ne.s32.totalorder %s1336_s7, %s1779_s13  ;;  %p1784_p9 = scmp.lt.s32.totalorder %s1336_s7, %s1336_s7 }
 0x38f   :  { %p1785_p10 = scmp.lt.s32.totalorder %s1783_s14, %s1779_s13 }
 0x391   :  { %p1786_p11 = por %p1785_p10, %p1784_p9 }
 0x393   :  { %p1787_p12 = pnand %p1786_p11, %p1780_p8 }
 0x395   :  { %1790 = shalt.err (!%p1787_p12)
}
 0x396   :  { %s1791_s1 = scalar_lea.hbm %s2027_s8, 32 }
 0x397   :  { %p1792_p13 = scmp.ne.s32.totalorder %s2027_s8, %s1791_s1  ;;  %p1795_p0 = scmp.lt.u32.totalorder %s1791_s1, %s2027_s8 }
 0x399   :  { %p1797_p1 = pnand %p1795_p0, %p1792_p13 }
 0x39b   :  { %1800 = shalt.err (!%p1797_p1)
}
 0x39c   :  { %s1813_s20 = smov 32   ;;  %s1814_s21 = smov 2  }
 0x39d   :  { %1341 = dma.vmem_to_hbm [thread:$0]  %s1336_s7, 32, %s2027_s8, [#allocation4], %s1813_s20, %s1813_s20, %s1814_s21  }
 0x39e   :  { %1803 = dma.done.wait [#allocation4], 128  }
 0x39f   :  { %1804 = vsyncadd [#allocation4], 4294967168 }
 0x3a0   :  { %1345 = vsyncpa [#allocation3], 1 }
 0x3a1   :  { %1346 = vsyncpa [#allocation4], 1 }

// kernel: tpu_custom_call.1
= control target key start
LH: loop header
LB: loop body
LE: loop exit
PB: predicated region body
PF: predicated region fallthrough
CT: control target
= control target key end

     0   :  { %13 = vsyncpa [#allocation3], 0  ;;  %s2019_s0 = inlined_call_operand.vmem [shape: f32[2,16], index: 0, kind: input, shape index: {}]   ;;  %s2020_s1 = inlined_call_operand.vmem [shape: f32[2,4], index: 1, kind: input, shape index: {}]   ;;  %s2021_s2 = inlined_call_operand.vmem [shape: bf16[20,512], index: 2, kind: input, shape index: {}]   ;;  %s2022_s3 = inlined_call_operand.vmem [shape: f32[1,512], index: 3, kind: input, shape index: {}]   ;;  %s2023_s4 = inlined_call_operand.hbm [shape: bf16[512,384], index: 4, kind: input, shape index: {}]   ;;  %s2024_s5 = inlined_call_operand.vmem [shape: f32[1,384], index: 5, kind: input, shape index: {}]   ;;  %s2025_s6 = inlined_call_operand.vmem [shape: bf16[384,4], index: 6, kind: input, shape index: {}]   ;;  %s2026_s7 = inlined_call_operand.vmem [shape: f32[1,4], index: 7, kind: input, shape index: {}]   ;;  %s2027_s8 = inlined_call_operand.hbm [shape: f32[2,4], index: 8, kind: output, shape index: {}]  }
   0x1   :  { %14 = vsyncpa [#allocation4], 0  ;;  %s1805_s27 = smov [#allocation2]   ;;  %s1757_s9 = scalar_lea.hbm %s2023_s4, 12288 }
   0x2   :  { %s28_s28 = sshll.u32 %s1805_s27, 4  ;;  %p1758_p0 = scmp.ne.s32.totalorder %s2023_s4, %s1757_s9  ;;  %s29_s28 = int_to_ptr.vmem [resolvable:$true] %s28_s28 }
   0x3   :  { %p1761_p1 = scmp.lt.u32.totalorder %s1757_s9, %s2023_s4 }
   0x5   :  { %p1763_p2 = pnand %p1761_p1, %p1758_p0 }
   0x7   :  { %1766 = shalt.err (!%p1763_p2)
}
   0x8   :  { %s1767_s14 = scalar_lea.vmem %s29_s28, 12288  ;;  %p1772_p4 = scmp.lt.s32.totalorder %s29_s28, %s29_s28 }
   0x9   :  { %p1768_p3 = scmp.ne.s32.totalorder %s29_s28, %s1767_s14  ;;  %p1773_p5 = scmp.lt.s32.totalorder %s1767_s14, %s1767_s14 }
   0xb   :  { %p1774_p6 = por %p1773_p5, %p1772_p4 }
   0xd   :  { %p1775_p7 = pnand %p1774_p6, %p1768_p3 }
   0xf   :  { %1778 = shalt.err (!%p1775_p7)
}
  0x10   :  { %s1806_s15 = smov 192   ;;  %s1807_s16 = smov 12  }
  0x11   :  { %34 = dma.hbm_to_vmem [thread:$0]  %s2023_s4, 12288, %s29_s28, [#allocation3], %s1806_s15, %s1806_s15, %s1807_s16  }
  0x12   :  { %1801 = dma.done.wait [#allocation3], 12288  }
  0x13   :  { %1802 = vsyncadd [#allocation3], 4294955008  ;;  %v1808_v0 = vmov 0   ;;  %v45_v1 = vld [vmem:[%s2020_s1] sm:$0xff]  ;;  %s1809_s21 = smov 16   ;;  %vm116_vm0 = vcmask 1041408  }
  0x14   :  { %161 = vmatprep.mubr.bf16.mxu0 %v1808_v0  ;;  %202 = vmatprep.mubr.bf16.mxu1 %v1808_v0  ;;  %v1592_v2 = vld [vmem:[%s2021_s2 + $0x4] ss:$16 sps:$4 sm:$0xff]   ;;  %v1594_v3 = vld [vmem:[%s2021_s2 + $0xc] ss:$16 sps:$4 sm:$0xff]   ;;  %v1596_v4 = vld [vmem:[%s2021_s2] ss:$16 sps:$4 sm:$0xff]  }
  0x15   :  { %48 = vrot.lane.b32.xlu0 %v45_v1, %s1809_s21  ;;  %v1597_v5 = vld [vmem:[%s2021_s2 + $0x8] ss:$16 sps:$4 sm:$0xff]   ;;  %129 = vmatprep.subr.bf16.mxu0 %v1592_v2  ;;  %v58_v6 = vld [vmem:[%s2021_s2 + $0x20] sm:$0x33]  ;;  %vm51_vm1 = vcmask 130048   ;;  %vm112_vm2 = vcmask 162816  }
  0x16   :  { %v59_v7 = vld [vmem:[%s2021_s2 + $0x28] sm:$0x33]  ;;  %170 = vmatprep.subr.bf16.mxu1 %v1594_v3  ;;  %130 = vmatpush1.bf16.msra.mxu0 %v1596_v4  ;;  %v1352_v8 = vcombine.high %v58_v6, %v58_v6  ;;  %v1351_v10 = vcombine.low %v58_v6, %v58_v6  ;;  %v1604_v12 = vld [vmem:[#allocation2 + $0x4] ss:$12 sps:$4 sm:$0xff]   ;;  %v1610_v26 = vld [vmem:[#allocation2 + $0x34] ss:$12 sps:$4 sm:$0xff]   ;;  %v62_v4 = vlaneseq }
  0x17   :  { %v1354_v9 = vcombine.high %v59_v7, %v59_v7  ;;  %171 = vmatpush1.bf16.msra.mxu1 %v1597_v5  ;;  %v1353_v11 = vcombine.low %v59_v7, %v59_v7  ;;  %v1629_v15 = vld [vmem:[#allocation2 + $0xc8] ss:$12 sps:$4 sm:$0xff]   ;;  %v46_v16 = vld [vmem:[%s2019_s0] sm:$0xff]  ;;  %v1608_v28 = vld [vmem:[#allocation2 + $0x30] ss:$12 sps:$4 sm:$0xff]   ;;  %vm1811_vm3 = vmmov 0  }
  0x18   :  { %1355 = vmatprep.subr.msk.bf16.mxu0 %vm116_vm0, %v1352_v8  ;;  %v118_v13 = vsel %vm116_vm0, %v1351_v10, 0  ;;  %v1602_v19 = vld [vmem:[#allocation2] ss:$12 sps:$4 sm:$0xff]   ;;  %v1630_v20 = vld [vmem:[#allocation2 + $0x8] ss:$12 sps:$4 sm:$0xff]   ;;  %v1896_v5 = vshrl.u32 %v62_v4, 7 }
  0x19   :  { %1357 = vmatprep.subr.msk.bf16.mxu1 %vm116_vm0, %v1354_v9  ;;  %v124_v14 = vsel %vm116_vm0, %v1353_v11, 0  ;;  %v1607_v22 = vld [vmem:[#allocation2 + $0x1c] ss:$12 sps:$4 sm:$0xff]   ;;  %v1634_v23 = vld [vmem:[#allocation2 + $0xe0] ss:$12 sps:$4 sm:$0xff]   ;;  %vm1328_vm4 = vcmask 31744  }
  0x1a   :  { %132 = vmatpush1.bf16.msra.mxu0 %v118_v13  ;;  %v1605_v24 = vld [vmem:[#allocation2 + $0x18] ss:$12 sps:$4 sm:$0xff]   ;;  %v1635_v25 = vld [vmem:[#allocation2 + $0x20] ss:$12 sps:$4 sm:$0xff]   ;;  %v1644_v31 = vld [vmem:[#allocation2 + $0x110] ss:$12 sps:$4 sm:$0xff]  }
  0x1b   :  { %173 = vmatpush1.bf16.msra.mxu1 %v124_v14  ;;  %876 = vmatprep.subr.bf16.mxu0 %v1604_v12  ;;  %v1639_v27 = vld [vmem:[#allocation2 + $0xf8] ss:$12 sps:$4 sm:$0xff]   ;;  %v1611_v32 = vld [vmem:[#allocation2 + $0x48] ss:$12 sps:$4 sm:$0xff]   ;;  %v1645_v33 = vld [vmem:[#allocation2 + $0x50] ss:$12 sps:$4 sm:$0xff]  }
  0x1c   :  { %1481 = vmatprep.subr.bf16.mxu1 %v1629_v15  ;;  %v1640_v29 = vld [vmem:[#allocation2 + $0x38] ss:$12 sps:$4 sm:$0xff]   ;;  %v1649_v35 = vld [vmem:[#allocation2 + $0x128] ss:$12 sps:$4 sm:$0xff]   ;;  %v1614_v36 = vld [vmem:[#allocation2 + $0x60] ss:$12 sps:$4 sm:$0xff]  }
  0x1d   :  { %v1613_v30 = vld [vmem:[#allocation2 + $0x4c] ss:$12 sps:$4 sm:$0xff]   ;;  %v1616_v34 = vld [vmem:[#allocation2 + $0x64] ss:$12 sps:$4 sm:$0xff]   ;;  %v1650_v37 = vld [vmem:[#allocation2 + $0x68] ss:$12 sps:$4 sm:$0xff]  }
  0x1e   :  { %v1619_v38 = vld [vmem:[#allocation2 + $0x7c] ss:$12 sps:$4 sm:$0xff]   ;;  %v1654_v39 = vld [vmem:[#allocation2 + $0x140] ss:$12 sps:$4 sm:$0xff]   ;;  %v1617_v40 = vld [vmem:[#allocation2 + $0x78] ss:$12 sps:$4 sm:$0xff]  }
  0x1f   :  { %v1655_v41 = vld [vmem:[#allocation2 + $0x80] ss:$12 sps:$4 sm:$0xff]   ;;  %v1620_v43 = vld [vmem:[#allocation2 + $0x90] ss:$12 sps:$4 sm:$0xff]   ;;  %v1623_v45 = vld [vmem:[#allocation2 + $0xa8] ss:$12 sps:$4 sm:$0xff]  }
  0x20   :  { %v1622_v42 = vld [vmem:[#allocation2 + $0x94] ss:$12 sps:$4 sm:$0xff]   ;;  %v1625_v44 = vld [vmem:[#allocation2 + $0xac] ss:$12 sps:$4 sm:$0xff]   ;;  %v1628_v46 = vld [vmem:[#allocation2 + $0xc4] ss:$12 sps:$4 sm:$0xff]  }
  0x21   :  { %v1626_v47 = vld [vmem:[#allocation2 + $0xc0] ss:$12 sps:$4 sm:$0xff]   ;;  %v1633_v48 = vld [vmem:[#allocation2 + $0xdc] ss:$12 sps:$4 sm:$0xff]   ;;  %v1631_v49 = vld [vmem:[#allocation2 + $0xd8] ss:$12 sps:$4 sm:$0xff]  }
  0x22   :  { %v1638_v50 = vld [vmem:[#allocation2 + $0xf4] ss:$12 sps:$4 sm:$0xff]   ;;  %v1636_v51 = vld [vmem:[#allocation2 + $0xf0] ss:$12 sps:$4 sm:$0xff]   ;;  %v1643_v52 = vld [vmem:[#allocation2 + $0x10c] ss:$12 sps:$4 sm:$0xff]  }
  0x23   :  { %v1641_v53 = vld [vmem:[#allocation2 + $0x108] ss:$12 sps:$4 sm:$0xff]   ;;  %v1648_v54 = vld [vmem:[#allocation2 + $0x124] ss:$12 sps:$4 sm:$0xff]   ;;  %v1646_v55 = vld [vmem:[#allocation2 + $0x120] ss:$12 sps:$4 sm:$0xff]  }
  0x24   :  { %v1653_v56 = vld [vmem:[#allocation2 + $0x13c] ss:$12 sps:$4 sm:$0xff]   ;;  %v1651_v57 = vld [vmem:[#allocation2 + $0x138] ss:$12 sps:$4 sm:$0xff]   ;;  %v1658_v58 = vld [vmem:[#allocation2 + $0x154] ss:$12 sps:$4 sm:$0xff]  }
  0x25   :  { %v1659_v59 = vld [vmem:[#allocation2 + $0x158] ss:$12 sps:$4 sm:$0xff]   ;;  %v1656_v60 = vld [vmem:[#allocation2 + $0x150] ss:$12 sps:$4 sm:$0xff]   ;;  %v1661_v0 = vld [vmem:[#allocation2 + $0x168] ss:$12 sps:$4 sm:$0xff]  }
  0x26   :  { %v1660_v61 = vld [vmem:[#allocation2 + $0x98] ss:$12 sps:$4 sm:$0xff]   ;;  %v1664_v63 = vld [vmem:[#allocation2 + $0x170] ss:$12 sps:$4 sm:$0xff]   ;;  %v1669_v3 = vld [vmem:[#allocation2 + $0x248] ss:$12 sps:$4 sm:$0xff]  }
  0x27   :  { %v1663_v62 = vld [vmem:[#allocation2 + $0x16c] ss:$12 sps:$4 sm:$0xff]   ;;  %v1665_v1 = vld [vmem:[#allocation2 + $0xb0] ss:$12 sps:$4 sm:$0xff]   ;;  %v64_v6 = vsub.s32 0, %v1896_v5  ;;  %v68_v8 = vsub.s32 1, %v1896_v5 }
  0x28   :  { %v1668_v2 = vld [vmem:[#allocation2 + $0x184] ss:$12 sps:$4 sm:$0xff]   ;;  %v1902_v7 = vld [vmem:[%s2022_s3] sm:$0xf]  ;;  %v76_v9 = vsub.s32 3, %v1896_v5 }
  0x29   :  { %v65_v10 = vrot.slane %v1902_v7, %v64_v6  ;;  %v69_v11 = vrot.slane %v1902_v7, %v68_v8  ;;  %v1709_v4 = vld [vmem:[#allocation2 + $0x258] ss:$12 sps:$4 sm:$0xff]  }
  0x2a   :  { %v77_v12 = vrot.slane %v1902_v7, %v76_v9  ;;  %v1712_v9 = vld [vmem:[#allocation2 + $0x270] ss:$12 sps:$4 sm:$0xff]  }
  0x87   :  { %v49_v17 = vpop.permute.xlu0 %48 }
  0x88   :  { %v52_v18 = vsel %vm51_vm1, %v46_v16, %v49_v17 }
  0x89   :  { %v53_v21 = vpack.c.bf16 %v52_v18, %v52_v18 }
  0x8b   :  { %1356 = vmatmul.mubr.msk.bf16.vlgmr.msra.gmra.mrb[0].mxu0 %vm112_vm2, %v53_v21  ;;  %1358 = vmatmul.mubr.msk.bf16.vlgmr.msra.gmra.mrb[0].mxu1 %vm112_vm2, %v53_v21 }
  0x8c   :  { %877 = vmatpush1.bf16.msra.mxu0 %v1602_v19  ;;  %1482 = vmatpush3.bf16.msra.mxu1 %v1630_v20 }
  0x8d   :  { %878 = vmatprep.subr.bf16.mxu0 %v1607_v22  ;;  %1483 = vmatprep.subr.bf16.mxu1 %v1634_v23 }
  0x90   :  { %879 = vmatpush1.bf16.msra.mxu0 %v1605_v24  ;;  %1484 = vmatpush3.bf16.msra.mxu1 %v1635_v25 }
  0x91   :  { %880 = vmatprep.subr.bf16.mxu0 %v1610_v26  ;;  %1485 = vmatprep.subr.bf16.mxu1 %v1639_v27 }
  0x94   :  { %881 = vmatpush1.bf16.msra.mxu0 %v1608_v28  ;;  %1486 = vmatpush3.bf16.msra.mxu1 %v1640_v29  ;;  %v1666_v28 = vld [vmem:[#allocation2 + $0x180] ss:$12 sps:$4 sm:$0xff]   ;;  %v1670_v29 = vld [vmem:[#allocation2 + $0x188] ss:$12 sps:$4 sm:$0xff]  }
  0x95   :  { %882 = vmatprep.subr.bf16.mxu0 %v1613_v30  ;;  %1487 = vmatprep.subr.bf16.mxu1 %v1644_v31  ;;  %v1673_v31 = vld [vmem:[#allocation2 + $0x19c] ss:$12 sps:$4 sm:$0xff]  }
  0x98   :  { %883 = vmatpush1.bf16.msra.mxu0 %v1611_v32  ;;  %1488 = vmatpush3.bf16.msra.mxu1 %v1645_v33  ;;  %v1674_v32 = vld [vmem:[#allocation2 + $0x260] ss:$12 sps:$4 sm:$0xff]  }
  0x99   :  { %884 = vmatprep.subr.bf16.mxu0 %v1616_v34  ;;  %1489 = vmatprep.subr.bf16.mxu1 %v1649_v35  ;;  %v1671_v34 = vld [vmem:[#allocation2 + $0x198] ss:$12 sps:$4 sm:$0xff]   ;;  %v1675_v35 = vld [vmem:[#allocation2 + $0x1a0] ss:$12 sps:$4 sm:$0xff]  }
  0x9c   :  { %885 = vmatpush1.bf16.msra.mxu0 %v1614_v36  ;;  %1490 = vmatpush3.bf16.msra.mxu1 %v1650_v37  ;;  %v1678_v36 = vld [vmem:[#allocation2 + $0x1b4] ss:$12 sps:$4 sm:$0xff]   ;;  %v1679_v37 = vld [vmem:[#allocation2 + $0x278] ss:$12 sps:$4 sm:$0xff]  }
  0x9d   :  { %886 = vmatprep.subr.bf16.mxu0 %v1619_v38  ;;  %1491 = vmatprep.subr.bf16.mxu1 %v1654_v39  ;;  %v1676_v38 = vld [vmem:[#allocation2 + $0x1b0] ss:$12 sps:$4 sm:$0xff]   ;;  %v1680_v39 = vld [vmem:[#allocation2 + $0x1b8] ss:$12 sps:$4 sm:$0xff]  }
  0xa0   :  { %887 = vmatpush1.bf16.msra.mxu0 %v1617_v40  ;;  %1492 = vmatpush3.bf16.msra.mxu1 %v1655_v41  ;;  %v1683_v40 = vld [vmem:[#allocation2 + $0x1cc] ss:$12 sps:$4 sm:$0xff]   ;;  %v1684_v41 = vld [vmem:[#allocation2 + $0x290] ss:$12 sps:$4 sm:$0xff]  }
  0xa1   :  { %888 = vmatprep.subr.bf16.mxu0 %v1622_v42  ;;  %1493 = vmatprep.subr.bf16.mxu1 %v1659_v59  ;;  %v1681_v42 = vld [vmem:[#allocation2 + $0x1c8] ss:$12 sps:$4 sm:$0xff]   ;;  %v1703_v59 = vld [vmem:[#allocation2 + $0x22c] ss:$12 sps:$4 sm:$0xff]  }
  0xa4   :  { %889 = vmatpush1.bf16.msra.mxu0 %v1620_v43  ;;  %1494 = vmatpush3.bf16.msra.mxu1 %v1660_v61  ;;  %v1685_v43 = vld [vmem:[#allocation2 + $0x1d0] ss:$12 sps:$4 sm:$0xff]   ;;  %v1701_v61 = vld [vmem:[#allocation2 + $0x228] ss:$12 sps:$4 sm:$0xff]  }
  0xa5   :  { %890 = vmatprep.subr.bf16.mxu0 %v1625_v44  ;;  %1495 = vmatprep.subr.bf16.mxu1 %v1664_v63  ;;  %v1688_v44 = vld [vmem:[#allocation2 + $0x1e4] ss:$12 sps:$4 sm:$0xff]  }
  0xa8   :  { %891 = vmatpush1.bf16.msra.mxu0 %v1623_v45  ;;  %1496 = vmatpush3.bf16.msra.mxu1 %v1665_v1  ;;  %v1689_v45 = vld [vmem:[#allocation2 + $0x2a8] ss:$12 sps:$4 sm:$0xff]   ;;  %v1706_v1 = vld [vmem:[#allocation2 + $0x240] ss:$12 sps:$4 sm:$0xff]  }
  0xa9   :  { %892 = vmatprep.subr.bf16.mxu0 %v1628_v46  ;;  %1503 = vmatprep.subr.bf16.mxu1 %v1669_v3  ;;  %v1686_v46 = vld [vmem:[#allocation2 + $0x1e0] ss:$12 sps:$4 sm:$0xff]   ;;  %v1711_v3 = vld [vmem:[#allocation2 + $0x25c] ss:$12 sps:$4 sm:$0xff]  }
  0xac   :  { %893 = vmatpush1.bf16.msra.mxu0 %v1626_v47  ;;  %v1690_v47 = vld [vmem:[#allocation2 + $0x1e8] ss:$12 sps:$4 sm:$0xff]  }
  0xad   :  { %894 = vmatprep.subr.bf16.mxu0 %v1633_v48  ;;  %v72_v48 = vsub.s32 2, %v1896_v5  ;;  %v1747_v5 = vld [vmem:[%s2025_s6 + $0x88] sm:$0xff]  }
  0xb0   :  { %895 = vmatpush1.bf16.msra.mxu0 %v1631_v49  ;;  %v1693_v49 = vld [vmem:[#allocation2 + $0x1fc] ss:$12 sps:$4 sm:$0xff]  }
  0xb1   :  { %896 = vmatprep.subr.bf16.mxu0 %v1638_v50  ;;  %v1694_v50 = vld [vmem:[#allocation2 + $0x2c0] ss:$12 sps:$4 sm:$0xff]  }
  0xb4   :  { %897 = vmatpush1.bf16.msra.mxu0 %v1636_v51  ;;  %v1691_v51 = vld [vmem:[#allocation2 + $0x1f8] ss:$12 sps:$4 sm:$0xff]  }
  0xb5   :  { %898 = vmatprep.subr.bf16.mxu0 %v1643_v52  ;;  %v1695_v52 = vld [vmem:[#allocation2 + $0x200] ss:$12 sps:$4 sm:$0xff]  }
  0xb8   :  { %899 = vmatpush1.bf16.msra.mxu0 %v1641_v53  ;;  %v73_v53 = vrot.slane %v1902_v7, %v72_v48  ;;  %v1714_v7 = vld [vmem:[#allocation2 + $0x274] ss:$12 sps:$4 sm:$0xff]  }
  0xb9   :  { %900 = vmatprep.subr.bf16.mxu0 %v1648_v54  ;;  %v1698_v54 = vld [vmem:[#allocation2 + $0x214] ss:$12 sps:$4 sm:$0xff]  }
  0xbc   :  { %901 = vmatpush1.bf16.msra.mxu0 %v1646_v55  ;;  %v1699_v55 = vld [vmem:[#allocation2 + $0x2d8] ss:$12 sps:$4 sm:$0xff]  }
  0xbd   :  { %902 = vmatprep.subr.bf16.mxu0 %v1653_v56  ;;  %v1696_v56 = vld [vmem:[#allocation2 + $0x210] ss:$12 sps:$4 sm:$0xff]  }
  0xc0   :  { %903 = vmatpush1.bf16.msra.mxu0 %v1651_v57  ;;  %v1700_v57 = vld [vmem:[#allocation2 + $0x218] ss:$12 sps:$4 sm:$0xff]  }
  0xc1   :  { %904 = vmatprep.subr.bf16.mxu0 %v1658_v58 }
  0xc4   :  { %905 = vmatpush1.bf16.msra.mxu0 %v1656_v60  ;;  %v1704_v60 = vld [vmem:[#allocation2 + $0x2f0] ss:$12 sps:$4 sm:$0xff]  }
  0xc5   :  { %906 = vmatprep.subr.bf16.mxu0 %v1663_v62  ;;  %v1705_v62 = vld [vmem:[#allocation2 + $0x230] ss:$12 sps:$4 sm:$0xff]  }
  0xc8   :  { %907 = vmatpush1.bf16.msra.mxu0 %v1661_v0  ;;  %v1708_v0 = vld [vmem:[#allocation2 + $0x244] ss:$12 sps:$4 sm:$0xff]  }
  0xc9   :  { %917 = vmatprep.subr.bf16.mxu0 %v1668_v2 }
 0x15e   :  { %v163_v13 = vpop.f32.mrb[0].mxu0  ;;  %v1913_v14 = vpop.f32.mrb[0].mxu1 }
 0x15f   :  { %v164_v15 = vadd.f32 %v163_v13, %v65_v10  ;;  %v165_v16 = vpop.f32.mrb[1].mxu0  ;;  %v206_v17 = vpop.f32.mrb[1].mxu1  ;;  %v205_v58 = vadd.f32 %v1913_v14, %v73_v53  ;;  %v1717_v10 = vld [vmem:[#allocation2 + $0x28c] ss:$12 sps:$4 sm:$0xff]   ;;  %v1723_v14 = vld [vmem:[#allocation2 + $0x2bc] ss:$12 sps:$4 sm:$0xff]  }
 0x160   :  { %v166_v18 = vadd.f32 %v165_v16, %v69_v11  ;;  %v207_v19 = vadd.f32 %v206_v17, %v77_v12  ;;  %v167_v20 = vpop.f32.mrb[2].mxu0  ;;  %v208_v21 = vpop.f32.mrb[2].mxu1  ;;  %v1715_v11 = vld [vmem:[#allocation2 + $0x288] ss:$12 sps:$4 sm:$0xff]   ;;  %v1720_v12 = vld [vmem:[#allocation2 + $0x2a4] ss:$12 sps:$4 sm:$0xff]  }
 0x161   :  { %v211_v22 = vmax.f32 %v164_v15, 0.0  ;;  %v168_v23 = vpop.f32.mrb[3].mxu0  ;;  %v209_v24 = vpop.f32.mrb[3].mxu1  ;;  %v213_v63 = vmax.f32 %v205_v58, 0.0  ;;  %v1718_v13 = vld [vmem:[#allocation2 + $0x2a0] ss:$12 sps:$4 sm:$0xff]  }
 0x162   :  { %v212_v25 = vmax.f32 %v166_v18, 0.0  ;;  %v214_v26 = vmax.f32 %v207_v19, 0.0  ;;  %v1721_v15 = vld [vmem:[#allocation2 + $0x2b8] ss:$12 sps:$4 sm:$0xff]   ;;  %v1726_v16 = vld [vmem:[#allocation2 + $0x2d4] ss:$12 sps:$4 sm:$0xff]  }
 0x163   :  { %v215_v30 = vpack.c.bf16 %v211_v22, %v211_v22  ;;  %v217_v2 = vpack.c.bf16 %v213_v63, %v213_v63  ;;  %v1724_v17 = vld [vmem:[#allocation2 + $0x2d0] ss:$12 sps:$4 sm:$0xff]   ;;  %v1729_v18 = vld [vmem:[#allocation2 + $0x2ec] ss:$12 sps:$4 sm:$0xff]   ;;  %v1727_v19 = vld [vmem:[#allocation2 + $0x2e8] ss:$12 sps:$4 sm:$0xff]  }
 0x164   :  { %v216_v27 = vpack.c.bf16 %v212_v25, %v212_v25  ;;  %v218_v33 = vpack.c.bf16 %v214_v26, %v214_v26  ;;  %v1730_v20 = vld [vmem:[%s2025_s6 + $0x40] sm:$0xff]   ;;  %v1732_v22 = vld [vmem:[%s2025_s6 + $0x48] sm:$0xff]   ;;  %v1734_v24 = vld [vmem:[%s2025_s6 + $0x50] sm:$0xff]  }
 0x165   :  { %v1731_v21 = vld [vmem:[%s2025_s6] sm:$0xff]   ;;  %v1733_v23 = vld [vmem:[%s2025_s6 + $0x8] sm:$0xff]   ;;  %v1735_v25 = vld [vmem:[%s2025_s6 + $0x10] sm:$0xff]  }
 0x166   :  { %908 = vmatprep.mubr.bf16.mxu0 %v216_v27  ;;  %990 = vmatprep.mubr.bf16.mxu1 %v216_v27  ;;  %v1736_v26 = vld [vmem:[%s2025_s6 + $0x58] sm:$0xff]  }
 0x167   :  { %909 = vmatmul.mubr.bf16.vlgmr.msra.gmra.mrb[4].mxu0 %v215_v30  ;;  %991 = vmatmul.mubr.bf16.vlgmr.msra.gmra.mrb[4].mxu1 %v215_v30  ;;  %v1737_v27 = vld [vmem:[%s2025_s6 + $0x18] sm:$0xff]   ;;  %v1740_v30 = vld [vmem:[%s2025_s6 + $0x68] sm:$0xff]  }
 0x168   :  { %918 = vmatpush1.bf16.msra.mxu0 %v1666_v28  ;;  %1504 = vmatpush3.bf16.msra.mxu1 %v1670_v29  ;;  %v1738_v28 = vld [vmem:[%s2025_s6 + $0x60] sm:$0xff]  }
 0x169   :  { %949 = vmatprep.mubr.bf16.mxu0 %v218_v33  ;;  %1030 = vmatprep.mubr.bf16.mxu1 %v218_v33  ;;  %v1739_v29 = vld [vmem:[%s2025_s6 + $0x20] sm:$0xff]   ;;  %v1743_v33 = vld [vmem:[%s2025_s6 + $0x30] sm:$0xff]  }
 0x16a   :  { %919 = vmatprep.subr.bf16.mxu0 %v1673_v31  ;;  %1505 = vmatprep.subr.bf16.mxu1 %v1674_v32  ;;  %v1741_v31 = vld [vmem:[%s2025_s6 + $0x28] sm:$0xff]   ;;  %v1742_v32 = vld [vmem:[%s2025_s6 + $0x70] sm:$0xff]  }
 0x16c   :  { %920 = vmatpush1.bf16.msra.mxu0 %v1671_v34  ;;  %1506 = vmatpush3.bf16.msra.mxu1 %v1675_v35  ;;  %v1744_v34 = vld [vmem:[%s2025_s6 + $0x78] sm:$0xff]  }
 0x16d   :  { %921 = vmatprep.subr.bf16.mxu0 %v1678_v36  ;;  %1507 = vmatprep.subr.bf16.mxu1 %v1679_v37  ;;  %v1745_v35 = vld [vmem:[%s2025_s6 + $0x38] sm:$0xff]   ;;  %v1810_v36 = vmov 0.0  }
 0x170   :  { %922 = vmatpush1.bf16.msra.mxu0 %v1676_v38  ;;  %1508 = vmatpush3.bf16.msra.mxu1 %v1680_v39 }
 0x171   :  { %923 = vmatprep.subr.bf16.mxu0 %v1683_v40  ;;  %1509 = vmatprep.subr.bf16.mxu1 %v1684_v41 }
 0x174   :  { %924 = vmatpush1.bf16.msra.mxu0 %v1681_v42  ;;  %1510 = vmatpush3.bf16.msra.mxu1 %v1685_v43  ;;  %v347_v42 = vld [vmem:[%s2024_s5] sm:$0x7] }
 0x175   :  { %925 = vmatprep.subr.bf16.mxu0 %v1688_v44  ;;  %1511 = vmatprep.subr.bf16.mxu1 %v1689_v45  ;;  %v360_v43 = vrot.slane %v347_v42, %v72_v48  ;;  %v356_v53 = vrot.slane %v347_v42, %v68_v8  ;;  %v1749_v8 = vld [vmem:[%s2025_s6 + $0x98] sm:$0xff]  }
 0x178   :  { %926 = vmatpush1.bf16.msra.mxu0 %v1686_v46  ;;  %1512 = vmatpush3.bf16.msra.mxu1 %v1690_v47 }
 0x179   :  { %927 = vmatprep.subr.bf16.mxu0 %v1693_v49  ;;  %1513 = vmatprep.subr.bf16.mxu1 %v1694_v50 }
 0x17c   :  { %928 = vmatpush1.bf16.msra.mxu0 %v1691_v51  ;;  %1514 = vmatpush3.bf16.msra.mxu1 %v1695_v52  ;;  %v352_v52 = vrot.slane %v347_v42, %v64_v6  ;;  %v1748_v6 = vld [vmem:[%s2025_s6 + $0x90] sm:$0xff]  }
 0x17d   :  { %929 = vmatprep.subr.bf16.mxu0 %v1698_v54  ;;  %1515 = vmatprep.subr.bf16.mxu1 %v1699_v55 }
 0x180   :  { %930 = vmatpush1.bf16.msra.mxu0 %v1696_v56  ;;  %1516 = vmatpush3.bf16.msra.mxu1 %v1700_v57 }
 0x181   :  { %931 = vmatprep.subr.bf16.mxu0 %v1703_v59  ;;  %1517 = vmatprep.subr.bf16.mxu1 %v1704_v60 }
 0x184   :  { %932 = vmatpush1.bf16.msra.mxu0 %v1701_v61  ;;  %1518 = vmatpush3.bf16.msra.mxu1 %v1705_v62  ;;  %v1746_v62 = vld [vmem:[%s2025_s6 + $0x80] sm:$0xff]  }
 0x185   :  { %933 = vmatprep.subr.bf16.mxu0 %v1708_v0  ;;  %1525 = vmatprep.subr.bf16.mxu1 %v1730_v20  ;;  %v1750_v0 = vld [vmem:[%s2025_s6 + $0xa0] sm:$0xff]  }
 0x187   :  { %1031 = vmatmul.mubr.bf16.vlgmr.msra.gmra.mrb[8].mxu1 %v217_v2 }
 0x188   :  { %934 = vmatpush1.bf16.msra.mxu0 %v1706_v1  ;;  %1526 = vmatpush3.bf16.msra.mxu1 %v1731_v21  ;;  %v1751_v1 = vld [vmem:[%s2025_s6 + $0xa8] sm:$0xff]  }
 0x189   :  { %935 = vmatprep.subr.bf16.mxu0 %v1711_v3  ;;  %1527 = vmatprep.subr.bf16.mxu1 %v1732_v22  ;;  %v1753_v3 = vld [vmem:[%s2025_s6 + $0xb8] sm:$0xff]  }
 0x18c   :  { %936 = vmatpush1.bf16.msra.mxu0 %v1709_v4  ;;  %1528 = vmatpush3.bf16.msra.mxu1 %v1733_v23  ;;  %v1756_v23 = vld [vmem:[%s2020_s1] sm:$0xff] }
 0x18d   :  { %937 = vmatprep.subr.bf16.mxu0 %v1714_v7  ;;  %1529 = vmatprep.subr.bf16.mxu1 %v1734_v24 }
 0x190   :  { %938 = vmatpush1.bf16.msra.mxu0 %v1712_v9  ;;  %1530 = vmatpush3.bf16.msra.mxu1 %v1735_v25 }
 0x191   :  { %939 = vmatprep.subr.bf16.mxu0 %v1717_v10  ;;  %1531 = vmatprep.subr.bf16.mxu1 %v1736_v26 }
 0x194   :  { %940 = vmatpush1.bf16.msra.mxu0 %v1715_v11  ;;  %1532 = vmatpush3.bf16.msra.mxu1 %v1737_v27 }
 0x195   :  { %941 = vmatprep.subr.bf16.mxu0 %v1720_v12  ;;  %1533 = vmatprep.subr.bf16.mxu1 %v1738_v28 }
 0x198   :  { %942 = vmatpush1.bf16.msra.mxu0 %v1718_v13  ;;  %1534 = vmatpush3.bf16.msra.mxu1 %v1739_v29 }
 0x199   :  { %943 = vmatprep.subr.bf16.mxu0 %v1723_v14  ;;  %1535 = vmatprep.subr.bf16.mxu1 %v1740_v30  ;;  %v1455_v14 = vld [vmem:[%s2026_s7] ss:$0 sm:$0xff] }
 0x19c   :  { %944 = vmatpush1.bf16.msra.mxu0 %v1721_v15  ;;  %1536 = vmatpush3.bf16.msra.mxu1 %v1741_v31 }
 0x19d   :  { %945 = vmatprep.subr.bf16.mxu0 %v1726_v16  ;;  %1537 = vmatprep.subr.bf16.mxu1 %v1742_v32 }
 0x1a0   :  { %946 = vmatpush1.bf16.msra.mxu0 %v1724_v17  ;;  %1538 = vmatpush3.bf16.msra.mxu1 %v1743_v33 }
 0x1a1   :  { %947 = vmatprep.subr.bf16.mxu0 %v1729_v18  ;;  %1539 = vmatprep.subr.bf16.mxu1 %v1744_v34 }
 0x1a4   :  { %948 = vmatpush1.bf16.msra.mxu0 %v1727_v19  ;;  %1540 = vmatpush3.bf16.msra.mxu1 %v1745_v35 }
 0x1a5   :  { %1556 = vmatprep.subr.bf16.mxu1 %v1810_v36 }
 0x1a7   :  { %950 = vmatmul.mubr.bf16.vlgmr.msra.gmra.mrb[4].mxu0 %v217_v2  ;;  %v1752_v2 = vld [vmem:[%s2025_s6 + $0xb0] sm:$0xff]  }
 0x23a   :  { %v1497_v37 = vpop.f32.mrb[4].mxu1 }
 0x23b   :  { %v1498_v38 = vpop.f32.mrb[5].mxu1 }
 0x23c   :  { %v1499_v39 = vadd.f32 %v1498_v38, %v1497_v37  ;;  %v1500_v40 = vpop.f32.mrb[6].mxu1 }
 0x23d   :  { %v1501_v41 = vpop.f32.mrb[7].mxu1 }
 0x23e   :  { %v993_v46 = vadd.f32 %v1499_v39, %v360_v43 }
 0x25a   :  { %v1519_v44 = vpop.f32.mrb[8].mxu1 }
 0x25b   :  { %v1520_v45 = vpop.f32.mrb[9].mxu1 }
 0x25c   :  { %v1521_v47 = vadd.f32 %v1520_v45, %v1519_v44  ;;  %v1522_v49 = vpop.f32.mrb[10].mxu1 }
 0x25d   :  { %v1523_v50 = vpop.f32.mrb[11].mxu1 }
 0x25e   :  { %v1033_v51 = vadd.f32 %v1521_v47, %v993_v46 }
 0x260   :  { %v1040_v4 = vmax.f32 %v1033_v51, 0.0 }
 0x262   :  { %v1043_v7 = vpack.c.bf16 %v1040_v4, %v1040_v4 }
 0x27a   :  { %v951_v54 = vpop.f32.mrb[4].mxu0 }
 0x27b   :  { %v1576_v55 = vadd.f32 %v951_v54, %v352_v52  ;;  %v953_v56 = vpop.f32.mrb[5].mxu0 }
 0x27c   :  { %v1577_v57 = vadd.f32 %v953_v56, %v356_v53  ;;  %v955_v58 = vpop.f32.mrb[6].mxu0 }
 0x27d   :  { %v1038_v59 = vmax.f32 %v1576_v55, 0.0  ;;  %v956_v48 = vpop.f32.mrb[7].mxu0 }
 0x27e   :  { %v1039_v60 = vmax.f32 %v1577_v57, 0.0 }
 0x27f   :  { %v1041_v63 = vpack.c.bf16 %v1038_v59, %v1038_v59 }
 0x280   :  { %v1042_v61 = vpack.c.bf16 %v1039_v60, %v1039_v60 }
 0x282   :  { %1275 = vmatprep.mubr.bf16.mxu1 %v1042_v61 }
 0x283   :  { %1276 = vmatmul.mubr.bf16.vlgmr.msra.gmra.mrb[12].mxu1 %v1041_v63 }
 0x284   :  { %1557 = vmatpush3.bf16.msra.mxu1 %v1746_v62  ;;  %1572 = vmatprep.mubr.msk.bf16.mxu1 %vm1811_vm3, %v1810_v36 }
 0x285   :  { %1558 = vmatprep.subr.bf16.mxu1 %v1810_v36 }
 0x288   :  { %1559 = vmatpush3.bf16.msra.mxu1 %v1747_v5 }
 0x289   :  { %1560 = vmatprep.subr.bf16.mxu1 %v1810_v36 }
 0x28c   :  { %1561 = vmatpush3.bf16.msra.mxu1 %v1748_v6 }
 0x28d   :  { %1562 = vmatprep.subr.bf16.mxu1 %v1810_v36 }
 0x290   :  { %1563 = vmatpush3.bf16.msra.mxu1 %v1749_v8 }
 0x291   :  { %1564 = vmatprep.subr.bf16.mxu1 %v1810_v36 }
 0x294   :  { %1565 = vmatpush3.bf16.msra.mxu1 %v1750_v0 }
 0x295   :  { %1566 = vmatprep.subr.bf16.mxu1 %v1810_v36 }
 0x298   :  { %1567 = vmatpush3.bf16.msra.mxu1 %v1751_v1 }
 0x299   :  { %1568 = vmatprep.subr.bf16.mxu1 %v1810_v36 }
 0x29c   :  { %1569 = vmatpush3.bf16.msra.mxu1 %v1752_v2 }
 0x29d   :  { %1570 = vmatprep.subr.bf16.mxu1 %v1810_v36 }
 0x2a0   :  { %1571 = vmatpush3.bf16.msra.mxu1 %v1753_v3 }
 0x2a3   :  { %1573 = vmatmul.mubr.bf16.vlgmr.msra.gmra.mrb[16].mxu1 %v1043_v7 }
 0x356   :  { %v1541_v9 = vpop.f32.mrb[12].mxu1 }
 0x357   :  { %v1542_v10 = vpop.f32.mrb[13].mxu1 }
 0x358   :  { %v1543_v11 = vadd.f32 %v1542_v10, %v1541_v9  ;;  %v1544_v12 = vpop.f32.mrb[14].mxu1 }
 0x359   :  { %v1545_v13 = vpop.f32.mrb[15].mxu1 }
 0x35a   :  { %v1278_v15 = vadd.f32 %v1543_v11, %v1455_v14 }
 0x376   :  { %v1317_v16 = vpop.f32.mrb[16].mxu1 }
 0x377   :  { %v1318_v17 = vadd.f32 %v1317_v16, %v1278_v15  ;;  %v1574_v18 = vpop.f32.mrb[17].mxu1 }
 0x378   :  { %v1320_v19 = vpop.f32.mrb[18].mxu1 }
 0x379   :  { %1754 = vtanh.f32 %v1318_v17  ;;  %v1575_v20 = vpop.f32.mrb[19].mxu1 }
 0x383   :  { %v1755_v21 = vpop.eup %1754 }
 0x384   :  { %v1324_v22 = vmul.f32 0.05, %v1755_v21 }
 0x386   :  { %v1325_v24 = vadd.f32 %v1756_v23, %v1324_v22 }
 0x388   :  { %v1480_v25 = vclamps-f32 %v1325_v24, 1.0 }
 0x38a   :  { %1329 = vst.msk [vmem:[#allocation5] sm:$0xff] %vm1328_vm4, %v1480_v25 }
 0x38b   :  { %1334 = vsyncadd [#allocation4], 96  ;;  %s1812_s3 = smov [#allocation5]  }
 0x38c   :  { %s1335_s7 = sshll.u32 %s1812_s3, 4  ;;  %s1336_s7 = int_to_ptr.vmem [resolvable:$true] %s1335_s7 }
 0x38d   :  { %s1779_s13 = scalar_lea.vmem %s1336_s7, 32  ;;  %s1783_s14 = scalar_lea.vmem %s1336_s7, 128 }
 0x38e   :  { %p1780_p8 = scmp.ne.s32.totalorder %s1336_s7, %s1779_s13  ;;  %p1784_p9 = scmp.lt.s32.totalorder %s1336_s7, %s1336_s7 }
 0x38f   :  { %p1785_p10 = scmp.lt.s32.totalorder %s1783_s14, %s1779_s13 }
 0x391   :  { %p1786_p11 = por %p1785_p10, %p1784_p9 }
 0x393   :  { %p1787_p12 = pnand %p1786_p11, %p1780_p8 }
 0x395   :  { %1790 = shalt.err (!%p1787_p12)
}
 0x396   :  { %s1791_s1 = scalar_lea.hbm %s2027_s8, 32 }
 0x397   :  { %p1792_p13 = scmp.ne.s32.totalorder %s2027_s8, %s1791_s1  ;;  %p1795_p0 = scmp.lt.u32.totalorder %s1791_s1, %s2027_s8 }
 0x399   :  { %p1797_p1 = pnand %p1795_p0, %p1792_p13 }
 0x39b   :  { %1800 = shalt.err (!%p1797_p1)
}
 0x39c   :  { %s1813_s20 = smov 32   ;;  %s1814_s21 = smov 2  }
 0x39d   :  { %1341 = dma.vmem_to_hbm [thread:$0]  %s1336_s7, 32, %s2027_s8, [#allocation4], %s1813_s20, %s1813_s20, %s1814_s21  }
 0x39e   :  { %1803 = dma.done.wait [#allocation4], 128  }
 0x39f   :  { %1804 = vsyncadd [#allocation4], 4294967168 }
 0x3a0   :  { %1345 = vsyncpa [#allocation3], 1 }
 0x3a1   :  { %1346 = vsyncpa [#allocation4], 1 }

</bundles_post_ra>
